<compile_context>
chip_gen: v5e
topology: v5e:2x2
jax: 0.10.0
libtpu: 0.0.40
codegen_flags: <defaults>
</compile_context>

<pallas_src>
import math

import jax
import jax.numpy as jnp
from jax.experimental import pallas as pl
from jax.experimental.pallas import tpu as pltpu


def make_attention_kernel(num_heads, dim, seq_len, block_q):
    head_dim = dim // num_heads
    inv_scale = 1.0 / math.sqrt(dim)      # PyTorch divides by sqrt(dim), not sqrt(head_dim)
    masked_bias = -1e9 * inv_scale        # mask is added before the /sqrt(dim) scale

    def attention_kernel(lens_ref, x_ref, wqkv_ref, wo_ref, out_ref,
                         q_scr, kt_scr, v_scr, bias_scr):
        b = pl.program_id(0)
        qi = pl.program_id(1)

        # ---- once per batch row: fused QKV projection + layout fix + bias row -------
        @pl.when(qi == 0)
        def _():
            qkv = jnp.dot(x_ref[0], wqkv_ref[...],
                          preferred_element_type=jnp.float32)            # (T, 3D) f32
            # fold 1/sqrt(dim) into Q: O(T*D) once instead of scaling scores per tile
            q_scr[...] = (qkv[:, :dim] * inv_scale).astype(jnp.bfloat16)  # (T, D)
            # K stored transposed: lane-dense in T, single amortized XLU transpose
            kt_scr[...] = jnp.transpose(qkv[:, dim:2 * dim]).astype(jnp.bfloat16)  # (D, T)
            v_scr[...] = qkv[:, 2 * dim:].astype(jnp.bfloat16)            # (T, D)
            # additive key-padding bias built once per batch as a (1, T) row
            key_pos = jax.lax.broadcasted_iota(jnp.int32, (1, seq_len), 1)
            bias_scr[...] = jnp.where(key_pos < lens_ref[b], 0.0, masked_bias)
            # TODO(synk): arbitrary dense (B, H, T, T) masks would need a mask-DMA path.

        q_start = pl.multiple_of(qi * block_q, block_q)
        q_tile = q_scr[pl.ds(q_start, block_q), :]                        # (bq, D) bf16
        bias = bias_scr[...]                                              # (1, T) f32

        # ---- per-head attention; Wo consumed head-blocked (no ctx transpose) --------
        # TODO(synk): for very long T, add a key-tile grid axis with flash-style online
        # softmax instead of materializing full (bq, T) scores (keeps v7x VMEM bounded).
        acc = jnp.zeros((block_q, dim), jnp.float32)
        for h in range(num_heads):                                        # static unroll
            lo = h * head_dim
            hi = lo + head_dim
            s = jnp.dot(q_tile[:, lo:hi], kt_scr[lo:hi, :],
                        preferred_element_type=jnp.float32)               # (bq, T) f32
            s = s + bias
            m = jnp.max(s, axis=-1, keepdims=True)
            p = jnp.exp(s - m)
            p = p * pl.reciprocal(jnp.sum(p, axis=-1, keepdims=True), approx=True)
            # TODO(synk): dropout(p=0.1) on the attention weights is omitted (eval mode).
            ctx_h = jnp.dot(p.astype(jnp.bfloat16), v_scr[:, lo:hi],
                            preferred_element_type=jnp.float32)           # (bq, hd) f32
            acc = acc + jnp.dot(ctx_h.astype(jnp.bfloat16), wo_ref[lo:hi, :],
                                preferred_element_type=jnp.float32)       # (bq, D) f32

        out_ref[0] = acc.astype(out_ref.dtype)

    return attention_kernel


def _vmem_limit_bytes():
    # v5e/v6e have 128 MiB physical VMEM, v7x only 64 MiB; query instead of hard-coding.
    try:
        cap = int(pltpu.get_tpu_info().vmem_capacity_bytes)
    except Exception:
        cap = 64 * 1024 * 1024
    return max(32 * 1024 * 1024, min(cap - 16 * 1024 * 1024, 100 * 1024 * 1024))


def attention_forward(x, wq, wk, wv, wo, valid_lens, num_heads, block_q=None):
    """x: (B, T, D) f32; weights: (D, D) PyTorch-style (out, in); valid_lens: (B,) int32 —
    number of valid keys per batch row (equivalent to the -1e9 additive padding mask)."""
    B, T, D = x.shape
    H = num_heads
    assert D % H == 0
    if block_q is None:
        block_q = T if T <= 256 else 256      # 256 matches the 256-wide MXU on v6e/v7x
    assert T % block_q == 0
    nq = T // block_q
    head_dim = D // H

    # Host-side (trace-time) weight prep: fuse Q/K/V, lay out (in, out), cast to bf16.
    w_qkv_t = jnp.concatenate([wq.T, wk.T, wv.T], axis=1).astype(jnp.bfloat16)  # (D, 3D)
    wo_t = wo.T.astype(jnp.bfloat16)                                            # (D, D)
    x_bf = x.astype(jnp.bfloat16)
    valid_lens = valid_lens.astype(jnp.int32)

    kernel = make_attention_kernel(H, D, T, block_q)

    cost = pl.CostEstimate(
        flops=int(2 * B * T * D * (4 * D + 2 * T)),
        transcendentals=int(B * H * T * T),
        bytes_accessed=int(x_bf.size * 2 + w_qkv_t.size * 2 + wo_t.size * 2
                           + B * T * D * 4 + B * 4),
    )

    # TODO(synk): for v7x megacore with tiny B, add a parallel head-group grid axis
    # (each core projects / attends its own head slice) so the second TC is not idle.
    def build(single_buffer_weights):
        w_kwargs = ({"pipeline_mode": pl.Buffered(1)}   # constant block index ->
                    if single_buffer_weights else {})   # second pipeline buffer is dead VMEM
        return pl.pallas_call(
            kernel,
            out_shape=jax.ShapeDtypeStruct((B, T, D), x.dtype),
            grid_spec=pltpu.PrefetchScalarGridSpec(
                num_scalar_prefetch=1,                  # valid_lens -> SMEM
                grid=(B, nq),
                in_specs=[
                    # x: same block across q tiles -> DMA'd only when b changes
                    pl.BlockSpec((1, T, D), lambda b, q, lens: (b, 0, 0)),
                    pl.BlockSpec((D, 3 * D), lambda b, q, lens: (0, 0), **w_kwargs),
                    pl.BlockSpec((D, D), lambda b, q, lens: (0, 0), **w_kwargs),
                ],
                out_specs=pl.BlockSpec((1, block_q, D), lambda b, q, lens: (b, q, 0)),
                scratch_shapes=[
                    pltpu.VMEM((T, D), jnp.bfloat16),   # Q (pre-scaled), lane-dense
                    pltpu.VMEM((D, T), jnp.bfloat16),   # K^T, lane-dense in T
                    pltpu.VMEM((T, D), jnp.bfloat16),   # V, lane-dense
                    pltpu.VMEM((1, T), jnp.float32),    # additive padding bias row
                ],
            ),
            compiler_params=pltpu.CompilerParams(
                dimension_semantics=("parallel", "arbitrary"),
                vmem_limit_bytes=_vmem_limit_bytes(),
            ),
            cost_estimate=cost,
        )

    args = (valid_lens, x_bf, w_qkv_t, wo_t)
    try:
        return build(True)(*args)
    except Exception:
        # pl.Buffered(1) not supported by this JAX build -> default double buffering.
        return build(False)(*args)


def _reference(x, wq, wk, wv, wo, valid_lens, num_heads):
    """Pure-JAX f32 transcription of the PyTorch Attention.forward (eval mode)."""
    B, T, D = x.shape
    hd = D // num_heads
    q = x @ wq.T
    k = x @ wk.T
    v = x @ wv.T
    q = q.reshape(B, T, num_heads, hd).transpose(0, 2, 1, 3)        # (B, H, T, hd)
    k = k.reshape(B, T, num_heads, hd).transpose(0, 2, 3, 1)        # (B, H, hd, T)
    v = v.reshape(B, T, num_heads, hd).transpose(0, 2, 1, 3)        # (B, H, T, hd)
    w = jnp.matmul(q, k)                                            # (B, H, T, T)
    mask = jnp.where(jnp.arange(T)[None, :] < valid_lens[:, None], 0.0, -1e9)
    w = w + mask[:, None, None, :]                                  # mask BEFORE scale
    p = jax.nn.softmax(w / math.sqrt(D), axis=-1)
    ctx = jnp.matmul(p, v)                                          # (B, H, T, hd)
    ctx = ctx.transpose(0, 2, 1, 3).reshape(B, T, D)
    return ctx @ wo.T


if __name__ == "__main__":
    # Small shapes consistent with the module's forward.
    B, T, D, H = 2, 8, 32, 4
    key = jax.random.PRNGKey(0)
    kx, kq, kk, kv, ko = jax.random.split(key, 5)

    x = jax.random.normal(kx, (B, T, D), dtype=jnp.float32)

    # initialize_layers: normal(mean=0, std=0.02), PyTorch Linear weight shape (out, in)
    std = 0.02
    wq = std * jax.random.normal(kq, (D, D), dtype=jnp.float32)
    wk = std * jax.random.normal(kk, (D, D), dtype=jnp.float32)
    wv = std * jax.random.normal(kv, (D, D), dtype=jnp.float32)
    wo = std * jax.random.normal(ko, (D, D), dtype=jnp.float32)

    # Padding: batch 0 attends to the first 6 keys, batch 1 to the first 5.
    valid_lens = jnp.array([6, 5], dtype=jnp.int32)

    out = attention_forward(x, wq, wk, wv, wo, valid_lens, num_heads=H)
    out = jax.block_until_ready(out)
    assert out.shape == (B, T, D)

    ref = _reference(x, wq, wk, wv, wo, valid_lens, H)
    # bf16 matmuls (f32 accumulation) + approx softmax reciprocal -> slightly looser atol.
    assert jnp.allclose(out, ref, atol=2e-3, rtol=5e-2), (
        float(jnp.max(jnp.abs(out - ref))))

    print("KERNEL_OK")
</pallas_src>

<mosaic_0001>
module attributes {stable_mosaic.version = 11 : i64} {
  func.func @attention_kernel(%arg0: i32, %arg1: i32, %arg2: memref<2xi32, #tpu.memory_space<smem>>, %arg3: memref<1x8x32xbf16, #tpu.memory_space<vmem>>, %arg4: memref<32x96xbf16, #tpu.memory_space<vmem>>, %arg5: memref<32x32xbf16, #tpu.memory_space<vmem>>, %arg6: memref<1x8x32xf32, #tpu.memory_space<vmem>>, %arg7: memref<8x32xbf16, #tpu.memory_space<vmem>>, %arg8: memref<32x8xbf16, #tpu.memory_space<vmem>>, %arg9: memref<8x32xbf16, #tpu.memory_space<vmem>>, %arg10: memref<1x8xf32, #tpu.memory_space<vmem>>) attributes {dimension_semantics = [#tpu.dimension_semantics<parallel>, #tpu.dimension_semantics<arbitrary>], iteration_bounds = array<i64: 2, 1>, scalar_prefetch = 1 : i64, scratch_operands = 4 : i64, tpu.core_type = #tpu.core_type<tc>, window_params = [{transform_indices = @transform_0, window_bounds = array<i64: 1, 8, 32>}, {pipeline_mode = #tpu.pipeline_mode<synchronous>, transform_indices = @transform_1, window_bounds = array<i64: 32, 96>}, {pipeline_mode = #tpu.pipeline_mode<synchronous>, transform_indices = @transform_2, window_bounds = array<i64: 32, 32>}, {transform_indices = @transform_3, window_bounds = array<i64: 1, 8, 32>}]} {
    %c0_i32 = arith.constant 0 : i32
    %0 = arith.cmpi eq, %arg1, %c0_i32 : i32
    %1 = arith.extui %0 : i1 to i32
    %c0_i32_0 = arith.constant 0 : i32
    %2 = arith.cmpi ne, %1, %c0_i32_0 : i32
    scf.if %2 {
      %c0_47 = arith.constant 0 : index
      %c0_48 = arith.constant 0 : index
      %c0_49 = arith.constant 0 : index
      %100 = vector.load %arg3[%c0_47, %c0_48, %c0_49] : memref<1x8x32xbf16, #tpu.memory_space<vmem>>, vector<1x8x32xbf16>
      %101 = vector.shape_cast %100 : vector<1x8x32xbf16> to vector<8x32xbf16>
      %c0_50 = arith.constant 0 : index
      %c0_51 = arith.constant 0 : index
      %102 = vector.load %arg4[%c0_50, %c0_51] : memref<32x96xbf16, #tpu.memory_space<vmem>>, vector<32x96xbf16>
      %cst_52 = arith.constant dense<0.000000e+00> : vector<8x96xf32>
      %103 = tpu.matmul %101, %102, %cst_52 {dimension_numbers = #tpu.dot_dimension_numbers<[1], [0], [0], [1], [0, 0, 1, 1], [], []>} : vector<8x32xbf16>, vector<32x96xbf16>, vector<8x96xf32> -> vector<8x96xf32>
      %104 = vector.extract_strided_slice %103 {offsets = [0, 0], sizes = [8, 32], strides = [1, 1]} : vector<8x96xf32> to vector<8x32xf32>
      %cst_53 = arith.constant 0.176776692 : f32
      %105 = vector.broadcast %cst_53 : f32 to vector<8x32xf32>
      %106 = arith.mulf %104, %105 : vector<8x32xf32>
      %107 = arith.truncf %106 : vector<8x32xf32> to vector<8x32xbf16>
      %c0_54 = arith.constant 0 : index
      %c0_55 = arith.constant 0 : index
      %108 = vector.load %arg7[%c0_54, %c0_55] : memref<8x32xbf16, #tpu.memory_space<vmem>>, vector<8x32xbf16>
      tpu.vector_store %arg7[%c0_54, %c0_55], %107 {strides = array<i32>} : memref<8x32xbf16, #tpu.memory_space<vmem>>, vector<8x32xbf16>,
      %109 = vector.extract_strided_slice %103 {offsets = [0, 32], sizes = [8, 32], strides = [1, 1]} : vector<8x96xf32> to vector<8x32xf32>
      %110 = tpu.transpose %109, [1, 0] : vector<8x32xf32> -> vector<32x8xf32>
      %111 = arith.truncf %110 : vector<32x8xf32> to vector<32x8xbf16>
      %c0_56 = arith.constant 0 : index
      %c0_57 = arith.constant 0 : index
      %112 = vector.load %arg8[%c0_56, %c0_57] : memref<32x8xbf16, #tpu.memory_space<vmem>>, vector<32x8xbf16>
      tpu.vector_store %arg8[%c0_56, %c0_57], %111 {strides = array<i32>} : memref<32x8xbf16, #tpu.memory_space<vmem>>, vector<32x8xbf16>,
      %113 = vector.extract_strided_slice %103 {offsets = [0, 64], sizes = [8, 32], strides = [1, 1]} : vector<8x96xf32> to vector<8x32xf32>
      %114 = arith.truncf %113 : vector<8x32xf32> to vector<8x32xbf16>
      %c0_58 = arith.constant 0 : index
      %c0_59 = arith.constant 0 : index
      %115 = vector.load %arg9[%c0_58, %c0_59] : memref<8x32xbf16, #tpu.memory_space<vmem>>, vector<8x32xbf16>
      tpu.vector_store %arg9[%c0_58, %c0_59], %114 {strides = array<i32>} : memref<8x32xbf16, #tpu.memory_space<vmem>>, vector<8x32xbf16>,
      %116 = tpu.iota {dimensions = array<i32: 1>} : vector<1x8xi32>
      %117 = arith.index_cast %arg0 : i32 to index
      %118 = memref.load %arg2[%117] : memref<2xi32, #tpu.memory_space<smem>>
      %119 = vector.broadcast %118 : i32 to vector<1x8xi32>
      %120 = arith.cmpi slt, %116, %119 : vector<1x8xi32>
      %cst_60 = arith.constant 0.000000e+00 : f32
      %cst_61 = arith.constant 0xCD28965F : f32
      %121 = vector.broadcast %cst_60 : f32 to vector<1x8xf32>
      %122 = vector.broadcast %cst_61 : f32 to vector<1x8xf32>
      %123 = arith.select %120, %121, %122 : vector<1x8xi1>, vector<1x8xf32>
      %c0_62 = arith.constant 0 : index
      %c0_63 = arith.constant 0 : index
      %124 = vector.load %arg10[%c0_62, %c0_63] : memref<1x8xf32, #tpu.memory_space<vmem>>, vector<1x8xf32>
      tpu.vector_store %arg10[%c0_62, %c0_63], %123 {strides = array<i32>} : memref<1x8xf32, #tpu.memory_space<vmem>>, vector<1x8xf32>,
    } else {
    }
    %c8_i32 = arith.constant 8 : i32
    %3 = arith.muli %arg1, %c8_i32 : i32
    %4 = tpu.assume_multiple %3, 8 : i32
    %5 = arith.index_cast %4 : i32 to index
    %c0 = arith.constant 0 : index
    %6 = vector.load %arg7[%5, %c0] : memref<8x32xbf16, #tpu.memory_space<vmem>>, vector<8x32xbf16>
    %c0_1 = arith.constant 0 : index
    %c0_2 = arith.constant 0 : index
    %7 = vector.load %arg10[%c0_1, %c0_2] : memref<1x8xf32, #tpu.memory_space<vmem>>, vector<1x8xf32>
    %cst = arith.constant 0.000000e+00 : f32
    %8 = vector.broadcast %cst : f32 to vector<8x32xf32>
    %9 = vector.extract_strided_slice %6 {offsets = [0, 0], sizes = [8, 8], strides = [1, 1]} : vector<8x32xbf16> to vector<8x8xbf16>
    %c0_3 = arith.constant 0 : index
    %c0_4 = arith.constant 0 : index
    %10 = vector.load %arg8[%c0_3, %c0_4] : memref<32x8xbf16, #tpu.memory_space<vmem>>, vector<8x8xbf16>
    %cst_5 = arith.constant dense<0.000000e+00> : vector<8x8xf32>
    %11 = tpu.matmul %9, %10, %cst_5 {dimension_numbers = #tpu.dot_dimension_numbers<[1], [0], [0], [1], [0, 0, 1, 1], [], []>} : vector<8x8xbf16>, vector<8x8xbf16>, vector<8x8xf32> -> vector<8x8xf32>
    %12 = vector.broadcast %7 : vector<1x8xf32> to vector<8x8xf32>
    %13 = arith.addf %11, %12 : vector<8x8xf32>
    %cst_6 = arith.constant dense<0xFF800000> : vector<8xf32>
    %14 = vector.multi_reduction <maximumf>, %13, %cst_6 [1] : vector<8x8xf32> to vector<8xf32>
    %15 = vector.shape_cast %14 : vector<8xf32> to vector<8x1xf32>
    %16 = vector.broadcast %15 : vector<8x1xf32> to vector<8x8xf32>
    %17 = arith.subf %13, %16 : vector<8x8xf32>
    %18 = math.exp %17 : vector<8x8xf32>
    %cst_7 = arith.constant dense<0.000000e+00> : vector<8xf32>
    %19 = vector.multi_reduction <add>, %18, %cst_7 [1] : vector<8x8xf32> to vector<8xf32>
    %20 = vector.shape_cast %19 : vector<8xf32> to vector<8x1xf32>
    %21 = tpu.reciprocal %20 {approx = true} : vector<8x1xf32> -> vector<8x1xf32>
    %22 = vector.broadcast %21 : vector<8x1xf32> to vector<8x8xf32>
    %23 = arith.mulf %18, %22 : vector<8x8xf32>
    %24 = arith.truncf %23 : vector<8x8xf32> to vector<8x8xbf16>
    %c0_8 = arith.constant 0 : index
    %c0_9 = arith.constant 0 : index
    %25 = vector.load %arg9[%c0_8, %c0_9] : memref<8x32xbf16, #tpu.memory_space<vmem>>, vector<8x8xbf16>
    %cst_10 = arith.constant dense<0.000000e+00> : vector<8x8xf32>
    %26 = tpu.matmul %24, %25, %cst_10 {dimension_numbers = #tpu.dot_dimension_numbers<[1], [0], [0], [1], [0, 0, 1, 1], [], []>} : vector<8x8xbf16>, vector<8x8xbf16>, vector<8x8xf32> -> vector<8x8xf32>
    %27 = arith.truncf %26 : vector<8x8xf32> to vector<8x8xbf16>
    %c0_11 = arith.constant 0 : index
    %c0_12 = arith.constant 0 : index
    %28 = vector.load %arg5[%c0_11, %c0_12] : memref<32x32xbf16, #tpu.memory_space<vmem>>, vector<8x32xbf16>
    %cst_13 = arith.constant dense<0.000000e+00> : vector<8x32xf32>
    %29 = tpu.matmul %27, %28, %cst_13 {dimension_numbers = #tpu.dot_dimension_numbers<[1], [0], [0], [1], [0, 0, 1, 1], [], []>} : vector<8x8xbf16>, vector<8x32xbf16>, vector<8x32xf32> -> vector<8x32xf32>
    %30 = arith.addf %8, %29 : vector<8x32xf32>
    %31 = vector.extract_strided_slice %6 {offsets = [0, 8], sizes = [8, 8], strides = [1, 1]} : vector<8x32xbf16> to vector<8x8xbf16>
    %c8 = arith.constant 8 : index
    %c0_14 = arith.constant 0 : index
    %32 = vector.load %arg8[%c8, %c0_14] : memref<32x8xbf16, #tpu.memory_space<vmem>>, vector<8x8xbf16>
    %cst_15 = arith.constant dense<0.000000e+00> : vector<8x8xf32>
    %33 = tpu.matmul %31, %32, %cst_15 {dimension_numbers = #tpu.dot_dimension_numbers<[1], [0], [0], [1], [0, 0, 1, 1], [], []>} : vector<8x8xbf16>, vector<8x8xbf16>, vector<8x8xf32> -> vector<8x8xf32>
    %34 = vector.broadcast %7 : vector<1x8xf32> to vector<8x8xf32>
    %35 = arith.addf %33, %34 : vector<8x8xf32>
    %cst_16 = arith.constant dense<0xFF800000> : vector<8xf32>
    %36 = vector.multi_reduction <maximumf>, %35, %cst_16 [1] : vector<8x8xf32> to vector<8xf32>
    %37 = vector.shape_cast %36 : vector<8xf32> to vector<8x1xf32>
    %38 = vector.broadcast %37 : vector<8x1xf32> to vector<8x8xf32>
    %39 = arith.subf %35, %38 : vector<8x8xf32>
    %40 = math.exp %39 : vector<8x8xf32>
    %cst_17 = arith.constant dense<0.000000e+00> : vector<8xf32>
    %41 = vector.multi_reduction <add>, %40, %cst_17 [1] : vector<8x8xf32> to vector<8xf32>
    %42 = vector.shape_cast %41 : vector<8xf32> to vector<8x1xf32>
    %43 = tpu.reciprocal %42 {approx = true} : vector<8x1xf32> -> vector<8x1xf32>
    %44 = vector.broadcast %43 : vector<8x1xf32> to vector<8x8xf32>
    %45 = arith.mulf %40, %44 : vector<8x8xf32>
    %46 = arith.truncf %45 : vector<8x8xf32> to vector<8x8xbf16>
    %c0_18 = arith.constant 0 : index
    %c8_19 = arith.constant 8 : index
    %47 = vector.load %arg9[%c0_18, %c8_19] : memref<8x32xbf16, #tpu.memory_space<vmem>>, vector<8x8xbf16>
    %cst_20 = arith.constant dense<0.000000e+00> : vector<8x8xf32>
    %48 = tpu.matmul %46, %47, %cst_20 {dimension_numbers = #tpu.dot_dimension_numbers<[1], [0], [0], [1], [0, 0, 1, 1], [], []>} : vector<8x8xbf16>, vector<8x8xbf16>, vector<8x8xf32> -> vector<8x8xf32>
    %49 = arith.truncf %48 : vector<8x8xf32> to vector<8x8xbf16>
    %c8_21 = arith.constant 8 : index
    %c0_22 = arith.constant 0 : index
    %50 = vector.load %arg5[%c8_21, %c0_22] : memref<32x32xbf16, #tpu.memory_space<vmem>>, vector<8x32xbf16>
    %cst_23 = arith.constant dense<0.000000e+00> : vector<8x32xf32>
    %51 = tpu.matmul %49, %50, %cst_23 {dimension_numbers = #tpu.dot_dimension_numbers<[1], [0], [0], [1], [0, 0, 1, 1], [], []>} : vector<8x8xbf16>, vector<8x32xbf16>, vector<8x32xf32> -> vector<8x32xf32>
    %52 = arith.addf %30, %51 : vector<8x32xf32>
    %53 = vector.extract_strided_slice %6 {offsets = [0, 16], sizes = [8, 8], strides = [1, 1]} : vector<8x32xbf16> to vector<8x8xbf16>
    %c16 = arith.constant 16 : index
    %c0_24 = arith.constant 0 : index
    %54 = vector.load %arg8[%c16, %c0_24] : memref<32x8xbf16, #tpu.memory_space<vmem>>, vector<8x8xbf16>
    %cst_25 = arith.constant dense<0.000000e+00> : vector<8x8xf32>
    %55 = tpu.matmul %53, %54, %cst_25 {dimension_numbers = #tpu.dot_dimension_numbers<[1], [0], [0], [1], [0, 0, 1, 1], [], []>} : vector<8x8xbf16>, vector<8x8xbf16>, vector<8x8xf32> -> vector<8x8xf32>
    %56 = vector.broadcast %7 : vector<1x8xf32> to vector<8x8xf32>
    %57 = arith.addf %55, %56 : vector<8x8xf32>
    %cst_26 = arith.constant dense<0xFF800000> : vector<8xf32>
    %58 = vector.multi_reduction <maximumf>, %57, %cst_26 [1] : vector<8x8xf32> to vector<8xf32>
    %59 = vector.shape_cast %58 : vector<8xf32> to vector<8x1xf32>
    %60 = vector.broadcast %59 : vector<8x1xf32> to vector<8x8xf32>
    %61 = arith.subf %57, %60 : vector<8x8xf32>
    %62 = math.exp %61 : vector<8x8xf32>
    %cst_27 = arith.constant dense<0.000000e+00> : vector<8xf32>
    %63 = vector.multi_reduction <add>, %62, %cst_27 [1] : vector<8x8xf32> to vector<8xf32>
    %64 = vector.shape_cast %63 : vector<8xf32> to vector<8x1xf32>
    %65 = tpu.reciprocal %64 {approx = true} : vector<8x1xf32> -> vector<8x1xf32>
    %66 = vector.broadcast %65 : vector<8x1xf32> to vector<8x8xf32>
    %67 = arith.mulf %62, %66 : vector<8x8xf32>
    %68 = arith.truncf %67 : vector<8x8xf32> to vector<8x8xbf16>
    %c0_28 = arith.constant 0 : index
    %c16_29 = arith.constant 16 : index
    %69 = vector.load %arg9[%c0_28, %c16_29] : memref<8x32xbf16, #tpu.memory_space<vmem>>, vector<8x8xbf16>
    %cst_30 = arith.constant dense<0.000000e+00> : vector<8x8xf32>
    %70 = tpu.matmul %68, %69, %cst_30 {dimension_numbers = #tpu.dot_dimension_numbers<[1], [0], [0], [1], [0, 0, 1, 1], [], []>} : vector<8x8xbf16>, vector<8x8xbf16>, vector<8x8xf32> -> vector<8x8xf32>
    %71 = arith.truncf %70 : vector<8x8xf32> to vector<8x8xbf16>
    %c16_31 = arith.constant 16 : index
    %c0_32 = arith.constant 0 : index
    %72 = vector.load %arg5[%c16_31, %c0_32] : memref<32x32xbf16, #tpu.memory_space<vmem>>, vector<8x32xbf16>
    %cst_33 = arith.constant dense<0.000000e+00> : vector<8x32xf32>
    %73 = tpu.matmul %71, %72, %cst_33 {dimension_numbers = #tpu.dot_dimension_numbers<[1], [0], [0], [1], [0, 0, 1, 1], [], []>} : vector<8x8xbf16>, vector<8x32xbf16>, vector<8x32xf32> -> vector<8x32xf32>
    %74 = arith.addf %52, %73 : vector<8x32xf32>
    %75 = vector.extract_strided_slice %6 {offsets = [0, 24], sizes = [8, 8], strides = [1, 1]} : vector<8x32xbf16> to vector<8x8xbf16>
    %c24 = arith.constant 24 : index
    %c0_34 = arith.constant 0 : index
    %76 = vector.load %arg8[%c24, %c0_34] : memref<32x8xbf16, #tpu.memory_space<vmem>>, vector<8x8xbf16>
    %cst_35 = arith.constant dense<0.000000e+00> : vector<8x8xf32>
    %77 = tpu.matmul %75, %76, %cst_35 {dimension_numbers = #tpu.dot_dimension_numbers<[1], [0], [0], [1], [0, 0, 1, 1], [], []>} : vector<8x8xbf16>, vector<8x8xbf16>, vector<8x8xf32> -> vector<8x8xf32>
    %78 = vector.broadcast %7 : vector<1x8xf32> to vector<8x8xf32>
    %79 = arith.addf %77, %78 : vector<8x8xf32>
    %cst_36 = arith.constant dense<0xFF800000> : vector<8xf32>
    %80 = vector.multi_reduction <maximumf>, %79, %cst_36 [1] : vector<8x8xf32> to vector<8xf32>
    %81 = vector.shape_cast %80 : vector<8xf32> to vector<8x1xf32>
    %82 = vector.broadcast %81 : vector<8x1xf32> to vector<8x8xf32>
    %83 = arith.subf %79, %82 : vector<8x8xf32>
    %84 = math.exp %83 : vector<8x8xf32>
    %cst_37 = arith.constant dense<0.000000e+00> : vector<8xf32>
    %85 = vector.multi_reduction <add>, %84, %cst_37 [1] : vector<8x8xf32> to vector<8xf32>
    %86 = vector.shape_cast %85 : vector<8xf32> to vector<8x1xf32>
    %87 = tpu.reciprocal %86 {approx = true} : vector<8x1xf32> -> vector<8x1xf32>
    %88 = vector.broadcast %87 : vector<8x1xf32> to vector<8x8xf32>
    %89 = arith.mulf %84, %88 : vector<8x8xf32>
    %90 = arith.truncf %89 : vector<8x8xf32> to vector<8x8xbf16>
    %c0_38 = arith.constant 0 : index
    %c24_39 = arith.constant 24 : index
    %91 = vector.load %arg9[%c0_38, %c24_39] : memref<8x32xbf16, #tpu.memory_space<vmem>>, vector<8x8xbf16>
    %cst_40 = arith.constant dense<0.000000e+00> : vector<8x8xf32>
    %92 = tpu.matmul %90, %91, %cst_40 {dimension_numbers = #tpu.dot_dimension_numbers<[1], [0], [0], [1], [0, 0, 1, 1], [], []>} : vector<8x8xbf16>, vector<8x8xbf16>, vector<8x8xf32> -> vector<8x8xf32>
    %93 = arith.truncf %92 : vector<8x8xf32> to vector<8x8xbf16>
    %c24_41 = arith.constant 24 : index
    %c0_42 = arith.constant 0 : index
    %94 = vector.load %arg5[%c24_41, %c0_42] : memref<32x32xbf16, #tpu.memory_space<vmem>>, vector<8x32xbf16>
    %cst_43 = arith.constant dense<0.000000e+00> : vector<8x32xf32>
    %95 = tpu.matmul %93, %94, %cst_43 {dimension_numbers = #tpu.dot_dimension_numbers<[1], [0], [0], [1], [0, 0, 1, 1], [], []>} : vector<8x8xbf16>, vector<8x32xbf16>, vector<8x32xf32> -> vector<8x32xf32>
    %96 = arith.addf %74, %95 : vector<8x32xf32>
    %c0_44 = arith.constant 0 : index
    %c0_45 = arith.constant 0 : index
    %c0_46 = arith.constant 0 : index
    %97 = vector.load %arg6[%c0_44, %c0_45, %c0_46] : memref<1x8x32xf32, #tpu.memory_space<vmem>>, vector<1x8x32xf32>
    %98 = vector.shape_cast %97 : vector<1x8x32xf32> to vector<8x32xf32>
    %99 = vector.shape_cast %96 : vector<8x32xf32> to vector<1x8x32xf32>
    tpu.vector_store %arg6[%c0_44, %c0_45, %c0_46], %99 {strides = array<i32>} : memref<1x8x32xf32, #tpu.memory_space<vmem>>, vector<1x8x32xf32>,
    return
  }
  func.func @transform_0(%arg0: i32, %arg1: i32, %arg2: memref<2xi32, #tpu.memory_space<smem>>) -> (i32, i32, i32) {
    %c0_i32 = arith.constant 0 : i32
    %c0_i32_0 = arith.constant 0 : i32
    %c0_i32_1 = arith.constant 0 : i32
    return %arg0, %c0_i32, %c0_i32_0 : i32, i32, i32
  }
  func.func @transform_1(%arg0: i32, %arg1: i32, %arg2: memref<2xi32, #tpu.memory_space<smem>>) -> (i32, i32) {
    %c0_i32 = arith.constant 0 : i32
    %c0_i32_0 = arith.constant 0 : i32
    %c0_i32_1 = arith.constant 0 : i32
    return %c0_i32, %c0_i32_0 : i32, i32
  }
  func.func @transform_2(%arg0: i32, %arg1: i32, %arg2: memref<2xi32, #tpu.memory_space<smem>>) -> (i32, i32) {
    %c0_i32 = arith.constant 0 : i32
    %c0_i32_0 = arith.constant 0 : i32
    %c0_i32_1 = arith.constant 0 : i32
    return %c0_i32, %c0_i32_0 : i32, i32
  }
  func.func @transform_3(%arg0: i32, %arg1: i32, %arg2: memref<2xi32, #tpu.memory_space<smem>>) -> (i32, i32, i32) {
    %c0_i32 = arith.constant 0 : i32
    %c0_i32_0 = arith.constant 0 : i32
    return %arg0, %arg1, %c0_i32 : i32, i32, i32
  }
}

module attributes {stable_mosaic.version = 11 : i64} {
  func.func @attention_kernel(%arg0: i32, %arg1: i32, %arg2: memref<2xi32, #tpu.memory_space<smem>>, %arg3: memref<1x8x32xbf16, #tpu.memory_space<vmem>>, %arg4: memref<32x96xbf16, #tpu.memory_space<vmem>>, %arg5: memref<32x32xbf16, #tpu.memory_space<vmem>>, %arg6: memref<1x8x32xf32, #tpu.memory_space<vmem>>, %arg7: memref<8x32xbf16, #tpu.memory_space<vmem>>, %arg8: memref<32x8xbf16, #tpu.memory_space<vmem>>, %arg9: memref<8x32xbf16, #tpu.memory_space<vmem>>, %arg10: memref<1x8xf32, #tpu.memory_space<vmem>>) attributes {dimension_semantics = [#tpu.dimension_semantics<parallel>, #tpu.dimension_semantics<arbitrary>], iteration_bounds = array<i64: 2, 1>, scalar_prefetch = 1 : i64, scratch_operands = 4 : i64, tpu.core_type = #tpu.core_type<tc>, window_params = [{transform_indices = @transform_0, window_bounds = array<i64: 1, 8, 32>}, {pipeline_mode = #tpu.pipeline_mode<synchronous>, transform_indices = @transform_1, window_bounds = array<i64: 32, 96>}, {pipeline_mode = #tpu.pipeline_mode<synchronous>, transform_indices = @transform_2, window_bounds = array<i64: 32, 32>}, {transform_indices = @transform_3, window_bounds = array<i64: 1, 8, 32>}]} {
    %c0_i32 = arith.constant 0 : i32
    %0 = arith.cmpi eq, %arg1, %c0_i32 : i32
    %1 = arith.extui %0 : i1 to i32
    %c0_i32_0 = arith.constant 0 : i32
    %2 = arith.cmpi ne, %1, %c0_i32_0 : i32
    scf.if %2 {
      %c0_47 = arith.constant 0 : index
      %c0_48 = arith.constant 0 : index
      %c0_49 = arith.constant 0 : index
      %100 = vector.load %arg3[%c0_47, %c0_48, %c0_49] : memref<1x8x32xbf16, #tpu.memory_space<vmem>>, vector<1x8x32xbf16>
      %101 = vector.shape_cast %100 : vector<1x8x32xbf16> to vector<8x32xbf16>
      %c0_50 = arith.constant 0 : index
      %c0_51 = arith.constant 0 : index
      %102 = vector.load %arg4[%c0_50, %c0_51] : memref<32x96xbf16, #tpu.memory_space<vmem>>, vector<32x96xbf16>
      %cst_52 = arith.constant dense<0.000000e+00> : vector<8x96xf32>
      %103 = tpu.matmul %101, %102, %cst_52 {dimension_numbers = #tpu.dot_dimension_numbers<[1], [0], [0], [1], [0, 0, 1, 1], [], []>} : vector<8x32xbf16>, vector<32x96xbf16>, vector<8x96xf32> -> vector<8x96xf32>
      %104 = vector.extract_strided_slice %103 {offsets = [0, 0], sizes = [8, 32], strides = [1, 1]} : vector<8x96xf32> to vector<8x32xf32>
      %cst_53 = arith.constant 0.176776692 : f32
      %105 = vector.broadcast %cst_53 : f32 to vector<8x32xf32>
      %106 = arith.mulf %104, %105 : vector<8x32xf32>
      %107 = arith.truncf %106 : vector<8x32xf32> to vector<8x32xbf16>
      %c0_54 = arith.constant 0 : index
      %c0_55 = arith.constant 0 : index
      %108 = vector.load %arg7[%c0_54, %c0_55] : memref<8x32xbf16, #tpu.memory_space<vmem>>, vector<8x32xbf16>
      tpu.vector_store %arg7[%c0_54, %c0_55], %107 {strides = array<i32>} : memref<8x32xbf16, #tpu.memory_space<vmem>>, vector<8x32xbf16>,
      %109 = vector.extract_strided_slice %103 {offsets = [0, 32], sizes = [8, 32], strides = [1, 1]} : vector<8x96xf32> to vector<8x32xf32>
      %110 = tpu.transpose %109, [1, 0] : vector<8x32xf32> -> vector<32x8xf32>
      %111 = arith.truncf %110 : vector<32x8xf32> to vector<32x8xbf16>
      %c0_56 = arith.constant 0 : index
      %c0_57 = arith.constant 0 : index
      %112 = vector.load %arg8[%c0_56, %c0_57] : memref<32x8xbf16, #tpu.memory_space<vmem>>, vector<32x8xbf16>
      tpu.vector_store %arg8[%c0_56, %c0_57], %111 {strides = array<i32>} : memref<32x8xbf16, #tpu.memory_space<vmem>>, vector<32x8xbf16>,
      %113 = vector.extract_strided_slice %103 {offsets = [0, 64], sizes = [8, 32], strides = [1, 1]} : vector<8x96xf32> to vector<8x32xf32>
      %114 = arith.truncf %113 : vector<8x32xf32> to vector<8x32xbf16>
      %c0_58 = arith.constant 0 : index
      %c0_59 = arith.constant 0 : index
      %115 = vector.load %arg9[%c0_58, %c0_59] : memref<8x32xbf16, #tpu.memory_space<vmem>>, vector<8x32xbf16>
      tpu.vector_store %arg9[%c0_58, %c0_59], %114 {strides = array<i32>} : memref<8x32xbf16, #tpu.memory_space<vmem>>, vector<8x32xbf16>,
      %116 = tpu.iota {dimensions = array<i32: 1>} : vector<1x8xi32>
      %117 = arith.index_cast %arg0 : i32 to index
      %118 = memref.load %arg2[%117] : memref<2xi32, #tpu.memory_space<smem>>
      %119 = vector.broadcast %118 : i32 to vector<1x8xi32>
      %120 = arith.cmpi slt, %116, %119 : vector<1x8xi32>
      %cst_60 = arith.constant 0.000000e+00 : f32
      %cst_61 = arith.constant 0xCD28965F : f32
      %121 = vector.broadcast %cst_60 : f32 to vector<1x8xf32>
      %122 = vector.broadcast %cst_61 : f32 to vector<1x8xf32>
      %123 = arith.select %120, %121, %122 : vector<1x8xi1>, vector<1x8xf32>
      %c0_62 = arith.constant 0 : index
      %c0_63 = arith.constant 0 : index
      %124 = vector.load %arg10[%c0_62, %c0_63] : memref<1x8xf32, #tpu.memory_space<vmem>>, vector<1x8xf32>
      tpu.vector_store %arg10[%c0_62, %c0_63], %123 {strides = array<i32>} : memref<1x8xf32, #tpu.memory_space<vmem>>, vector<1x8xf32>,
    } else {
    }
    %c8_i32 = arith.constant 8 : i32
    %3 = arith.muli %arg1, %c8_i32 : i32
    %4 = tpu.assume_multiple %3, 8 : i32
    %5 = arith.index_cast %4 : i32 to index
    %c0 = arith.constant 0 : index
    %6 = vector.load %arg7[%5, %c0] : memref<8x32xbf16, #tpu.memory_space<vmem>>, vector<8x32xbf16>
    %c0_1 = arith.constant 0 : index
    %c0_2 = arith.constant 0 : index
    %7 = vector.load %arg10[%c0_1, %c0_2] : memref<1x8xf32, #tpu.memory_space<vmem>>, vector<1x8xf32>
    %cst = arith.constant 0.000000e+00 : f32
    %8 = vector.broadcast %cst : f32 to vector<8x32xf32>
    %9 = vector.extract_strided_slice %6 {offsets = [0, 0], sizes = [8, 8], strides = [1, 1]} : vector<8x32xbf16> to vector<8x8xbf16>
    %c0_3 = arith.constant 0 : index
    %c0_4 = arith.constant 0 : index
    %10 = vector.load %arg8[%c0_3, %c0_4] : memref<32x8xbf16, #tpu.memory_space<vmem>>, vector<8x8xbf16>
    %cst_5 = arith.constant dense<0.000000e+00> : vector<8x8xf32>
    %11 = tpu.matmul %9, %10, %cst_5 {dimension_numbers = #tpu.dot_dimension_numbers<[1], [0], [0], [1], [0, 0, 1, 1], [], []>} : vector<8x8xbf16>, vector<8x8xbf16>, vector<8x8xf32> -> vector<8x8xf32>
    %12 = vector.broadcast %7 : vector<1x8xf32> to vector<8x8xf32>
    %13 = arith.addf %11, %12 : vector<8x8xf32>
    %cst_6 = arith.constant dense<0xFF800000> : vector<8xf32>
    %14 = vector.multi_reduction <maximumf>, %13, %cst_6 [1] : vector<8x8xf32> to vector<8xf32>
    %15 = vector.shape_cast %14 : vector<8xf32> to vector<8x1xf32>
    %16 = vector.broadcast %15 : vector<8x1xf32> to vector<8x8xf32>
    %17 = arith.subf %13, %16 : vector<8x8xf32>
    %18 = math.exp %17 : vector<8x8xf32>
    %cst_7 = arith.constant dense<0.000000e+00> : vector<8xf32>
    %19 = vector.multi_reduction <add>, %18, %cst_7 [1] : vector<8x8xf32> to vector<8xf32>
    %20 = vector.shape_cast %19 : vector<8xf32> to vector<8x1xf32>
    %21 = tpu.reciprocal %20 {approx = true} : vector<8x1xf32> -> vector<8x1xf32>
    %22 = vector.broadcast %21 : vector<8x1xf32> to vector<8x8xf32>
    %23 = arith.mulf %18, %22 : vector<8x8xf32>
    %24 = arith.truncf %23 : vector<8x8xf32> to vector<8x8xbf16>
    %c0_8 = arith.constant 0 : index
    %c0_9 = arith.constant 0 : index
    %25 = vector.load %arg9[%c0_8, %c0_9] : memref<8x32xbf16, #tpu.memory_space<vmem>>, vector<8x8xbf16>
    %cst_10 = arith.constant dense<0.000000e+00> : vector<8x8xf32>
    %26 = tpu.matmul %24, %25, %cst_10 {dimension_numbers = #tpu.dot_dimension_numbers<[1], [0], [0], [1], [0, 0, 1, 1], [], []>} : vector<8x8xbf16>, vector<8x8xbf16>, vector<8x8xf32> -> vector<8x8xf32>
    %27 = arith.truncf %26 : vector<8x8xf32> to vector<8x8xbf16>
    %c0_11 = arith.constant 0 : index
    %c0_12 = arith.constant 0 : index
    %28 = vector.load %arg5[%c0_11, %c0_12] : memref<32x32xbf16, #tpu.memory_space<vmem>>, vector<8x32xbf16>
    %cst_13 = arith.constant dense<0.000000e+00> : vector<8x32xf32>
    %29 = tpu.matmul %27, %28, %cst_13 {dimension_numbers = #tpu.dot_dimension_numbers<[1], [0], [0], [1], [0, 0, 1, 1], [], []>} : vector<8x8xbf16>, vector<8x32xbf16>, vector<8x32xf32> -> vector<8x32xf32>
    %30 = arith.addf %8, %29 : vector<8x32xf32>
    %31 = vector.extract_strided_slice %6 {offsets = [0, 8], sizes = [8, 8], strides = [1, 1]} : vector<8x32xbf16> to vector<8x8xbf16>
    %c8 = arith.constant 8 : index
    %c0_14 = arith.constant 0 : index
    %32 = vector.load %arg8[%c8, %c0_14] : memref<32x8xbf16, #tpu.memory_space<vmem>>, vector<8x8xbf16>
    %cst_15 = arith.constant dense<0.000000e+00> : vector<8x8xf32>
    %33 = tpu.matmul %31, %32, %cst_15 {dimension_numbers = #tpu.dot_dimension_numbers<[1], [0], [0], [1], [0, 0, 1, 1], [], []>} : vector<8x8xbf16>, vector<8x8xbf16>, vector<8x8xf32> -> vector<8x8xf32>
    %34 = vector.broadcast %7 : vector<1x8xf32> to vector<8x8xf32>
    %35 = arith.addf %33, %34 : vector<8x8xf32>
    %cst_16 = arith.constant dense<0xFF800000> : vector<8xf32>
    %36 = vector.multi_reduction <maximumf>, %35, %cst_16 [1] : vector<8x8xf32> to vector<8xf32>
    %37 = vector.shape_cast %36 : vector<8xf32> to vector<8x1xf32>
    %38 = vector.broadcast %37 : vector<8x1xf32> to vector<8x8xf32>
    %39 = arith.subf %35, %38 : vector<8x8xf32>
    %40 = math.exp %39 : vector<8x8xf32>
    %cst_17 = arith.constant dense<0.000000e+00> : vector<8xf32>
    %41 = vector.multi_reduction <add>, %40, %cst_17 [1] : vector<8x8xf32> to vector<8xf32>
    %42 = vector.shape_cast %41 : vector<8xf32> to vector<8x1xf32>
    %43 = tpu.reciprocal %42 {approx = true} : vector<8x1xf32> -> vector<8x1xf32>
    %44 = vector.broadcast %43 : vector<8x1xf32> to vector<8x8xf32>
    %45 = arith.mulf %40, %44 : vector<8x8xf32>
    %46 = arith.truncf %45 : vector<8x8xf32> to vector<8x8xbf16>
    %c0_18 = arith.constant 0 : index
    %c8_19 = arith.constant 8 : index
    %47 = vector.load %arg9[%c0_18, %c8_19] : memref<8x32xbf16, #tpu.memory_space<vmem>>, vector<8x8xbf16>
    %cst_20 = arith.constant dense<0.000000e+00> : vector<8x8xf32>
    %48 = tpu.matmul %46, %47, %cst_20 {dimension_numbers = #tpu.dot_dimension_numbers<[1], [0], [0], [1], [0, 0, 1, 1], [], []>} : vector<8x8xbf16>, vector<8x8xbf16>, vector<8x8xf32> -> vector<8x8xf32>
    %49 = arith.truncf %48 : vector<8x8xf32> to vector<8x8xbf16>
    %c8_21 = arith.constant 8 : index
    %c0_22 = arith.constant 0 : index
    %50 = vector.load %arg5[%c8_21, %c0_22] : memref<32x32xbf16, #tpu.memory_space<vmem>>, vector<8x32xbf16>
    %cst_23 = arith.constant dense<0.000000e+00> : vector<8x32xf32>
    %51 = tpu.matmul %49, %50, %cst_23 {dimension_numbers = #tpu.dot_dimension_numbers<[1], [0], [0], [1], [0, 0, 1, 1], [], []>} : vector<8x8xbf16>, vector<8x32xbf16>, vector<8x32xf32> -> vector<8x32xf32>
    %52 = arith.addf %30, %51 : vector<8x32xf32>
    %53 = vector.extract_strided_slice %6 {offsets = [0, 16], sizes = [8, 8], strides = [1, 1]} : vector<8x32xbf16> to vector<8x8xbf16>
    %c16 = arith.constant 16 : index
    %c0_24 = arith.constant 0 : index
    %54 = vector.load %arg8[%c16, %c0_24] : memref<32x8xbf16, #tpu.memory_space<vmem>>, vector<8x8xbf16>
    %cst_25 = arith.constant dense<0.000000e+00> : vector<8x8xf32>
    %55 = tpu.matmul %53, %54, %cst_25 {dimension_numbers = #tpu.dot_dimension_numbers<[1], [0], [0], [1], [0, 0, 1, 1], [], []>} : vector<8x8xbf16>, vector<8x8xbf16>, vector<8x8xf32> -> vector<8x8xf32>
    %56 = vector.broadcast %7 : vector<1x8xf32> to vector<8x8xf32>
    %57 = arith.addf %55, %56 : vector<8x8xf32>
    %cst_26 = arith.constant dense<0xFF800000> : vector<8xf32>
    %58 = vector.multi_reduction <maximumf>, %57, %cst_26 [1] : vector<8x8xf32> to vector<8xf32>
    %59 = vector.shape_cast %58 : vector<8xf32> to vector<8x1xf32>
    %60 = vector.broadcast %59 : vector<8x1xf32> to vector<8x8xf32>
    %61 = arith.subf %57, %60 : vector<8x8xf32>
    %62 = math.exp %61 : vector<8x8xf32>
    %cst_27 = arith.constant dense<0.000000e+00> : vector<8xf32>
    %63 = vector.multi_reduction <add>, %62, %cst_27 [1] : vector<8x8xf32> to vector<8xf32>
    %64 = vector.shape_cast %63 : vector<8xf32> to vector<8x1xf32>
    %65 = tpu.reciprocal %64 {approx = true} : vector<8x1xf32> -> vector<8x1xf32>
    %66 = vector.broadcast %65 : vector<8x1xf32> to vector<8x8xf32>
    %67 = arith.mulf %62, %66 : vector<8x8xf32>
    %68 = arith.truncf %67 : vector<8x8xf32> to vector<8x8xbf16>
    %c0_28 = arith.constant 0 : index
    %c16_29 = arith.constant 16 : index
    %69 = vector.load %arg9[%c0_28, %c16_29] : memref<8x32xbf16, #tpu.memory_space<vmem>>, vector<8x8xbf16>
    %cst_30 = arith.constant dense<0.000000e+00> : vector<8x8xf32>
    %70 = tpu.matmul %68, %69, %cst_30 {dimension_numbers = #tpu.dot_dimension_numbers<[1], [0], [0], [1], [0, 0, 1, 1], [], []>} : vector<8x8xbf16>, vector<8x8xbf16>, vector<8x8xf32> -> vector<8x8xf32>
    %71 = arith.truncf %70 : vector<8x8xf32> to vector<8x8xbf16>
    %c16_31 = arith.constant 16 : index
    %c0_32 = arith.constant 0 : index
    %72 = vector.load %arg5[%c16_31, %c0_32] : memref<32x32xbf16, #tpu.memory_space<vmem>>, vector<8x32xbf16>
    %cst_33 = arith.constant dense<0.000000e+00> : vector<8x32xf32>
    %73 = tpu.matmul %71, %72, %cst_33 {dimension_numbers = #tpu.dot_dimension_numbers<[1], [0], [0], [1], [0, 0, 1, 1], [], []>} : vector<8x8xbf16>, vector<8x32xbf16>, vector<8x32xf32> -> vector<8x32xf32>
    %74 = arith.addf %52, %73 : vector<8x32xf32>
    %75 = vector.extract_strided_slice %6 {offsets = [0, 24], sizes = [8, 8], strides = [1, 1]} : vector<8x32xbf16> to vector<8x8xbf16>
    %c24 = arith.constant 24 : index
    %c0_34 = arith.constant 0 : index
    %76 = vector.load %arg8[%c24, %c0_34] : memref<32x8xbf16, #tpu.memory_space<vmem>>, vector<8x8xbf16>
    %cst_35 = arith.constant dense<0.000000e+00> : vector<8x8xf32>
    %77 = tpu.matmul %75, %76, %cst_35 {dimension_numbers = #tpu.dot_dimension_numbers<[1], [0], [0], [1], [0, 0, 1, 1], [], []>} : vector<8x8xbf16>, vector<8x8xbf16>, vector<8x8xf32> -> vector<8x8xf32>
    %78 = vector.broadcast %7 : vector<1x8xf32> to vector<8x8xf32>
    %79 = arith.addf %77, %78 : vector<8x8xf32>
    %cst_36 = arith.constant dense<0xFF800000> : vector<8xf32>
    %80 = vector.multi_reduction <maximumf>, %79, %cst_36 [1] : vector<8x8xf32> to vector<8xf32>
    %81 = vector.shape_cast %80 : vector<8xf32> to vector<8x1xf32>
    %82 = vector.broadcast %81 : vector<8x1xf32> to vector<8x8xf32>
    %83 = arith.subf %79, %82 : vector<8x8xf32>
    %84 = math.exp %83 : vector<8x8xf32>
    %cst_37 = arith.constant dense<0.000000e+00> : vector<8xf32>
    %85 = vector.multi_reduction <add>, %84, %cst_37 [1] : vector<8x8xf32> to vector<8xf32>
    %86 = vector.shape_cast %85 : vector<8xf32> to vector<8x1xf32>
    %87 = tpu.reciprocal %86 {approx = true} : vector<8x1xf32> -> vector<8x1xf32>
    %88 = vector.broadcast %87 : vector<8x1xf32> to vector<8x8xf32>
    %89 = arith.mulf %84, %88 : vector<8x8xf32>
    %90 = arith.truncf %89 : vector<8x8xf32> to vector<8x8xbf16>
    %c0_38 = arith.constant 0 : index
    %c24_39 = arith.constant 24 : index
    %91 = vector.load %arg9[%c0_38, %c24_39] : memref<8x32xbf16, #tpu.memory_space<vmem>>, vector<8x8xbf16>
    %cst_40 = arith.constant dense<0.000000e+00> : vector<8x8xf32>
    %92 = tpu.matmul %90, %91, %cst_40 {dimension_numbers = #tpu.dot_dimension_numbers<[1], [0], [0], [1], [0, 0, 1, 1], [], []>} : vector<8x8xbf16>, vector<8x8xbf16>, vector<8x8xf32> -> vector<8x8xf32>
    %93 = arith.truncf %92 : vector<8x8xf32> to vector<8x8xbf16>
    %c24_41 = arith.constant 24 : index
    %c0_42 = arith.constant 0 : index
    %94 = vector.load %arg5[%c24_41, %c0_42] : memref<32x32xbf16, #tpu.memory_space<vmem>>, vector<8x32xbf16>
    %cst_43 = arith.constant dense<0.000000e+00> : vector<8x32xf32>
    %95 = tpu.matmul %93, %94, %cst_43 {dimension_numbers = #tpu.dot_dimension_numbers<[1], [0], [0], [1], [0, 0, 1, 1], [], []>} : vector<8x8xbf16>, vector<8x32xbf16>, vector<8x32xf32> -> vector<8x32xf32>
    %96 = arith.addf %74, %95 : vector<8x32xf32>
    %c0_44 = arith.constant 0 : index
    %c0_45 = arith.constant 0 : index
    %c0_46 = arith.constant 0 : index
    %97 = vector.load %arg6[%c0_44, %c0_45, %c0_46] : memref<1x8x32xf32, #tpu.memory_space<vmem>>, vector<1x8x32xf32>
    %98 = vector.shape_cast %97 : vector<1x8x32xf32> to vector<8x32xf32>
    %99 = vector.shape_cast %96 : vector<8x32xf32> to vector<1x8x32xf32>
    tpu.vector_store %arg6[%c0_44, %c0_45, %c0_46], %99 {strides = array<i32>} : memref<1x8x32xf32, #tpu.memory_space<vmem>>, vector<1x8x32xf32>,
    return
  }
  func.func @transform_0(%arg0: i32, %arg1: i32, %arg2: memref<2xi32, #tpu.memory_space<smem>>) -> (i32, i32, i32) {
    %c0_i32 = arith.constant 0 : i32
    %c0_i32_0 = arith.constant 0 : i32
    %c0_i32_1 = arith.constant 0 : i32
    return %arg0, %c0_i32, %c0_i32_0 : i32, i32, i32
  }
  func.func @transform_1(%arg0: i32, %arg1: i32, %arg2: memref<2xi32, #tpu.memory_space<smem>>) -> (i32, i32) {
    %c0_i32 = arith.constant 0 : i32
    %c0_i32_0 = arith.constant 0 : i32
    %c0_i32_1 = arith.constant 0 : i32
    return %c0_i32, %c0_i32_0 : i32, i32
  }
  func.func @transform_2(%arg0: i32, %arg1: i32, %arg2: memref<2xi32, #tpu.memory_space<smem>>) -> (i32, i32) {
    %c0_i32 = arith.constant 0 : i32
    %c0_i32_0 = arith.constant 0 : i32
    %c0_i32_1 = arith.constant 0 : i32
    return %c0_i32, %c0_i32_0 : i32, i32
  }
  func.func @transform_3(%arg0: i32, %arg1: i32, %arg2: memref<2xi32, #tpu.memory_space<smem>>) -> (i32, i32, i32) {
    %c0_i32 = arith.constant 0 : i32
    %c0_i32_0 = arith.constant 0 : i32
    return %arg0, %arg1, %c0_i32 : i32, i32, i32
  }
}

</mosaic_0001>

<bundles_post_ra>
// kernel: tpu_custom_call.1
= control target key start
LH: loop header
LB: loop body
LE: loop exit
PB: predicated region body
PF: predicated region fallthrough
CT: control target
= control target key end

     0   :  { %s1128_s18 = smov [#allocation7]   ;;  %s1368_s0 = inlined_call_operand.hbm [shape: s32[2], index: 0, kind: input, shape index: {}]   ;;  %s1369_s1 = inlined_call_operand.hbm [shape: bf16[2,8,32], index: 1, kind: input, shape index: {}]   ;;  %s1370_s2 = inlined_call_operand.hbm [shape: bf16[32,96], index: 2, kind: input, shape index: {}]   ;;  %s1371_s3 = inlined_call_operand.hbm [shape: bf16[32,32], index: 3, kind: input, shape index: {}]   ;;  %s1372_s4 = inlined_call_operand.hbm [shape: f32[2,8,32], index: 4, kind: output, shape index: {}]  }
   0x1   :  { %s10_s17 = sshll.u32 %s1368_s0, 4  ;;  %s11_s17 = int_to_ptr.hbm [resolvable:$true] %s10_s17 }
   0x2   :  { %13 = dma.hbm_to_smem %s11_s17, 16, %s1128_s18, [#allocation6] }
   0x3   :  { %1090 = dma.done.wait [#allocation6], 16 }
   0x4   :  { %1091 = vsyncadd [#allocation6], 4294967280 }
   0x5   :  { %16 = sfence }
   0x6   :  { %17 = vsyncpa [#allocation9], 0 }
   0x7   :  { %19 = vsyncpa [#allocation9 + $0x1], 0 }
   0x8   :  { %20 = vsyncpa [#allocation12], 0 }
   0x9   :  { %21 = vsyncpa [#allocation10], 0 }
   0xa   :  { %23 = vsyncpa [#allocation10 + $0x1], 0  ;;  %s1167_s19 = smov 0   ;;  %s1169_s20 = smov 0  }
   0xb   :  { %s1171_s21 = smov 0   ;;  %s1173_s22 = smov 0  }
   0xc   :  { %s1175_s0 = smov 0   ;;  %s1177_s23 = smov 0  }
   0xd LB: > { %s786_s24 = sadd.s32 4294967295, %s1126_s23   ;;  %p788_p0 = scmp.ge.s32.totalorder %s1126_s23, 1  ;;  %s1126_s23 = sphi %s1177_s23, %s29_s23   ;;  %s1122_s0 = sphi %s1175_s0, %s1382_s0   ;;  %s1118_s22 = sphi %s1173_s22, %s1381_s22   ;;  %s1114_s21 = sphi %s1171_s21, %s1380_s21   ;;  %s1110_s20 = sphi %s1169_s20, %s1379_s20   ;;  %s1106_s19 = sphi %s1167_s19, %s1378_s19  }
   0xe   : > { %p1201_p1 = scmp.eq.s32.totalorder %s786_s24, 0  ;;  %p142_p2 = scmp.lt.s32.totalorder %s1126_s23, 3 }
   0xf   : > { %s153_s28 = sshll.u32 %s1370_s2, 4  ;;  %s1129_s30 = smov [#allocation11]   ;;  %s154_s28 = int_to_ptr.hbm [resolvable:$true] %s153_s28 }
  0x10   : > { %p1209_p3 = pnand %p788_p0, %p142_p2  ;;  %s155_s5 = sshll.u32 %s1129_s30, 4  ;;  %s156_s5 = int_to_ptr.vmem [resolvable:$true] %s155_s5 }
  0x11   : > { %p791_p6 = scmp.ge.s32.totalorder %s1126_s23, 2  ;;  %s167_s8 = sshll.u32 %s1371_s3, 4  ;;  %s168_s8 = int_to_ptr.hbm [resolvable:$true] %s167_s8 }
  0x12   : > { %p838_p4 = pneg %p1209_p3  ;;  %s1130_s9 = smov 64  }
  0x13   : > { %s1131_s10 = smov 4   ;;  %s1132_s11 = smov [#allocation13]  }
  0x14   : > { %p839_p5 = pnand %p838_p4, %p1201_p1  ;;  %s169_s12 = sshll.u32 %s1132_s11, 4  ;;  %s170_s12 = int_to_ptr.vmem [resolvable:$true] %s169_s12 }
  0x15   : > { %s41_s13 = sadd.s32 1, %s1122_s0  ;;  %s787_s14 = sadd.s32 4294967294, %s1126_s23  }
  0x16   : > { %841 = dma.hbm_to_vmem [thread:$0]  (!%p839_p5), %s154_s28, 256, %s156_s5, [#allocation12], %s1130_s9, %s1130_s9, %s1131_s10  }
  0x17   : > { %844 = dma.hbm_to_vmem [thread:$0]  (!%p839_p5), %s168_s8, 256, %s170_s12, [#allocation12], %s1130_s9, %s1130_s9, %s1131_s10  }
  0x18   : > { %p43_p7 = scmp.ge.s32.totalorder %s41_s13, 2  ;;  %s48_s15 = sadd.s32 1, %s1114_s21 }
  0x19   : > { %p55_p8 = scmp.ne.s32.totalorder %s1114_s21, %s1110_s20  ;;  %p56_p9 = scmp.eq.s32.totalorder %s1126_s23, 0 }
  0x1a   : > { %s1384_s13 = smov (%p43_p7, %s41_s13), 0  ;;  %p61_p10 = scmp.ne.s32.totalorder %s1110_s20, %s1106_s19 }
  0x1b   : > { %s45_s16 = ssub.s32 %s1122_s0, %s1384_s13  ;;  %p129_p11 = scmp.eq.s32.totalorder %s786_s24, 1 }
  0x1c   : > { %p46_p12 = scmp.eq.s32.totalorder %s45_s16, 0  ;;  %p1237_p13 = por %p1201_p1, %p61_p10 }
  0x1d   : > { %p1241_p0 = por %p129_p11, %p55_p8  ;;  %p135_p2 = scmp.eq.s32.totalorder %s787_s14, 1 }
  0x1e   : > { %s1246_s26 = scalar_select %p46_p12, %s1114_s21, %s48_s15  }
  0x1f   : > { %p57_p4 = por %p56_p9, %p55_p8  ;;  %p1248_p5 = por %p135_p2, %p61_p10 }
  0x20   : > { %s183_s28 = sand.u32 1, %s1114_s21   ;;  %s793_s24 = sshll.u32 %s1122_s0, 2 }
  0x21   : > { %p855_p7 = scmp.lt.s32.totalorder %s1126_s23, 2  ;;  %s792_s30 = sshll.u32 %s183_s28, 2 }
  0x22   : > { %s191_s7 = scalar_lea.hbm %s1369_s1, %s793_s24  ;;  %s187_s9 = scalar_lea.vmem [#allocation8], %s792_s30 }
  0x23   : > { %s193_s8 = sshll.u32 %s191_s7, 4  ;;  %s195_s10 = sshll.u32 %s187_s9, 4  ;;  %s194_s8 = int_to_ptr.hbm [resolvable:$true] %s193_s8  ;;  %s196_s10 = int_to_ptr.vmem [resolvable:$true] %s195_s10 }
  0x24   : > { %p846_p11 = pnand %p855_p7, %p57_p4  ;;  %s184_s11 = scalar_lea.sflag [#allocation9], %s183_s28 }
  0x25   : > { %204 = sbr.rel (%p1209_p3) target bundleno = 1666 (0x682), region = 32  ;;  %s1261_s12 = sand.u32 (!%p1209_p3), 1, %s1110_s20  }
  0x26   : > { %848 = dma.hbm_to_vmem [thread:$0]  (!%p846_p11), %s194_s8, 64, %s196_s10, %s184_s11  }
  0x27   : > { %s795_s14 = sshll.u32 (!%p1209_p3), %s1261_s12, 2  ;;  %s207_s15 = scalar_lea.sflag (!%p1209_p3), [#allocation9], %s1261_s12 }
  0x28   : > { %s210_s16 = scalar_lea.vmem (!%p1209_p3), [#allocation8], %s795_s14 }
  0x2a   : > { %1093 = dma.done.wait (%p1237_p13), %s207_s15, 64  }
  0x2b   : > { %1095 = vsyncadd (%p1237_p13), %s207_s15, 4294967232 }
  0x2c   : > { %1097 = dma.done.wait (%p1201_p1), [#allocation12], 512  }
  0x2d   : > { %1099 = vsyncadd (%p1201_p1), [#allocation12], 4294966784  ;;  %v825_v0 = vld [vmem:[#allocation11 + $0x8] sm:$0xff]  ;;  %v824_v1 = vld [vmem:[#allocation11] sm:$0xff]  ;;  %vm266_vm0 = vcmask 261120   ;;  %s1133_s29 = smov 96   ;;  %v338_v8 = vlaneseq }
  0x2e   : > { %276 = vmatpush.bf16.msra.mxu0 %v825_v0  ;;  %v249_v2 = vld [vmem:[%s210_s16] sm:$0xf]  ;;  %vm285_vm1 = vcmask 257024   ;;  %s340_s25 = sld [smem:[#allocation7 + %s1118_s22]]  ;;  %vm344_vm2 = vcmask 57344   ;;  %vm327_vm4 = vcmask 60416  }
  0x2f   : > { %v339_v10 = vand.u32 127, %v338_v8  ;;  %v1134_v11 = vmov -1.7677669e+08   ;;  %vm361_vm5 = vcmask 1043456   ;;  %vm357_vm6 = vcmask 64512   ;;  %s1135_s17 = smov 64  }
  0x30   : > { %s1136_s28 = smov 104   ;;  %s1137_s24 = smov 120   ;;  %v411_v48 = vld [vmem:[#allocation13] sm:$0xf] }
  0x31   : > { %s1138_s30 = smov 112   ;;  %v498_v49 = vsel %vm361_vm5, %v411_v48, 0  ;;  %v646_v48 = vld [vmem:[#allocation13 + $0xc] sm:$0xf]  ;;  %s798_s5 = sshll.u32 %s1261_s12, 3 }
  0x32   : > { %277 = vmatpush.bf16.msra.mxu0 %v824_v1  ;;  %s821_s6 = sshll.u32 %s1118_s22, 3  ;;  %s243_s10 = scalar_lea.vmem [#allocation14], %s798_s5 }
  0x33   : > { %s681_s9 = scalar_lea.hbm %s1372_s4, %s821_s6  ;;  %s683_s11 = sshll.u32 %s243_s10, 4  ;;  %s684_s11 = int_to_ptr.vmem [resolvable:$true] %s683_s11 }
  0x34   : > { %v341_v9 = vstv %s340_s25  ;;  %s685_s14 = sshll.u32 %s681_s9, 4  ;;  %s670_s15 = scalar_lea.sflag [#allocation10], %s1261_s12  ;;  %s686_s14 = int_to_ptr.hbm [resolvable:$true] %s685_s14 }
  0x35   : > { %807 = vmatmul.msk.bf16.vlgmr.msra.gmra.mxu0 %vm266_vm0, %v249_v2  ;;  %vm342_vm3 = vcmp.lt.s32.totalorder %v339_v10, %v341_v9  ;;  %s1052_s22 = sshra.s32 %s686_s14, 4  ;;  %s1053_s22 = int_to_ptr.hbm [resolvable:$true] %s1052_s22 }
  0x36   : > { %v343_v12 = vsel %vm342_vm3, 0.0, %v1134_v11  ;;  %s1054_s16 = scalar_lea.hbm %s1053_s22, 8  ;;  %p1059_p9 = scmp.lt.s32.totalorder %s1053_s22, %s1372_s4 }
  0x37   : > { %345 = vst.msk [vmem:[#allocation5] sm:$0x1] %vm344_vm2, %v343_v12  ;;  %p1055_p1 = scmp.ne.s32.totalorder %s1053_s22, %s1054_s16 }
  0x39   : > { %p1056_p3 = pnand %p1055_p1, %p1241_p0 }
  0x3b   : > { %p1057_p8 = pneg %p1056_p3 }
  0x3e   : > { %v1279_v18 = vld [vmem:[#allocation5] ss:$0 sm:$0xff] }
  0xb2   : > { %v279_v3 = vpop.f32.mrf.mxu0 }
  0xb3   : > { %v283_v4 = vmul.f32 0.17677669, %v279_v3  ;;  %288 = vrot.lane.b32.xlu0 %v279_v3, %s1133_s29  ;;  %v332_v23 = vpack.c.bf16 %v279_v3, %v279_v3 }
  0xb5   : > { %v284_v5 = vpack.c.bf16 %v283_v4, %v283_v4 }
  0xb7   : > { %286 = vst.msk [vmem:[#allocation2] sm:$0xf] %vm285_vm1, %v284_v5 }
  0xba   : > { %v281_v6 = vpop.f32.mrf.mxu0 }
  0xbe   : > { %v351_v17 = vld [vmem:[#allocation2] sm:$0xf] }
  0xbf   : > { %v414_v24 = vunpack.c.l.b16 %v351_v17 }
  0xc1   : > { %v415_v25 = vpack.c.b16 %v414_v24, %v414_v24 }
 0x125   : > { %v289_v7 = vpop.permute.xlu0 %288 }
 0x126   : > { %291 = vxpose.xlu0.b32.start.end [1/1] (short) (narrow) %v289_v7, 32 }
 0x1ca   : > { %v307_v13 = vpop.trf.xlu0 }
 0x1cb   : > { %v323_v14 = vpack.c.bf16 %v307_v13, %v307_v13 }
 0x1cd   : > { %328 = vst.msk [vmem:[#allocation3] sm:$0xf] %vm327_vm4, %v323_v14 }
 0x1d2   : > { %v308_v31 = vpop.trf.xlu0 }
 0x1d3   : > { %v324_v32 = vpack.c.bf16 %v308_v31, %v308_v31 }
 0x1d4   : > { %v353_v15 = vld [vmem:[#allocation3] sm:$0xf] }
 0x1d5   : > { %v363_v16 = vsel %vm361_vm5, %v353_v15, 0  ;;  %329 = vst.msk [vmem:[#allocation3 + $0x4] sm:$0xf] %vm327_vm4, %v324_v32 }
 0x1d6   : > { %372 = vmatpush.bf16.msra.mxu1 %v363_v16 }
 0x1d9   : > { %808 = vmatmul.msk.bf16.vlgmr.msra.gmra.mxu1 %vm357_vm6, %v351_v17 }
 0x1da   : > { %v309_v36 = vpop.trf.xlu0 }
 0x1db   : > { %v325_v38 = vpack.c.bf16 %v309_v36, %v309_v36 }
 0x1dc   : > { %v412_v37 = vld [vmem:[#allocation3 + $0x4] sm:$0xf] }
 0x1dd   : > { %v422_v39 = vsel %vm361_vm5, %v412_v37, 0  ;;  %330 = vst.msk [vmem:[#allocation3 + $0x8] sm:$0xf] %vm327_vm4, %v325_v38 }
 0x1de   : > { %431 = vmatpush.bf16.msra.mxu3 %v422_v39 }
 0x1e2   : > { %507 = vmatpush.bf16.msrb.mxu3 %v498_v49  ;;  %v310_v50 = vpop.trf.xlu0  ;;  %v651_v49 = vsel %vm361_vm5, %v646_v48, 0 }
 0x1e3   : > { %v326_v51 = vpack.c.bf16 %v310_v50, %v310_v50  ;;  %v569_v50 = vld [vmem:[#allocation13 + $0x8] sm:$0xf] }
 0x1e4   : > { %v513_v40 = vld [vmem:[#allocation3 + $0x8] sm:$0xf] }
 0x1e5   : > { %v520_v41 = vsel %vm361_vm5, %v513_v40, 0  ;;  %331 = vst.msk [vmem:[#allocation3 + $0xc] sm:$0xf] %vm327_vm4, %v326_v51  ;;  %v574_v51 = vsel %vm361_vm5, %v569_v50, 0 }
 0x1e6   : > { %529 = vmatpush.bf16.msrb.mxu0 %v520_v41 }
 0x1ec   : > { %v590_v52 = vld [vmem:[#allocation3 + $0xc] sm:$0xf] }
 0x1ed   : > { %v597_v53 = vsel %vm361_vm5, %v590_v52, 0 }
 0x256   : > { %v374_v19 = vpop.f32.mrf.mxu1 }
 0x257   : > { %v375_v20 = vadd.f32 %v1279_v18, %v374_v19 }
 0x259   : > { %v378_v21 = vsel %vm357_vm6, %v375_v20, -inf }
 0x25a   : > { %379 = vmax.xlane.f32.xlu1 %v378_v21 }
 0x25e   : > { %v376_v22 = vpop.f32.mrf.mxu1 }
 0x273   : > { %334 = vrot.lane.b32.xlu1 %v332_v23, %s1135_s17  ;;  %s1058_s17 = scalar_lea.hbm %s1372_s4, 16 }
 0x274   : > { %p1060_p10 = scmp.lt.s32.totalorder %s1058_s17, %s1054_s16 }
 0x276   : > { %p1061_p12 = por %p1060_p10, %p1059_p9 }
 0x278   : > { %p1062_p13 = pnand %p1061_p12, %p1057_p8 }
 0x27b   : > { %591 = vrot.lane.b32.xlu1 %v415_v25, %s1136_s28 }
 0x2cd   : > { %v380_v26 = vpop.xlane.xlu1 %379 }
 0x2ce   : > { %v381_v27 = vsub.f32 %v375_v20, %v380_v26 }
 0x2d0   : > { %v382_v28 = vmul.f32 1.442695, %v381_v27 }
 0x2d2   : > { %920 = vpow2.f32 %v382_v28 }
 0x2d8   : > { %v921_v29 = vpop.eup %920 }
 0x2d9   : > { %v384_v30 = vsel %vm357_vm6, %v921_v29, 0.0 }
 0x2da   : > { %385 = vadd.xlane.f32.xlu2 %v384_v30 }
 0x2e5   : > { %v335_v33 = vpop.permute.xlu1 %334 }
 0x2e6   : > { %337 = vst.msk [vmem:[#allocation4] sm:$0xf] %vm285_vm1, %v335_v33  ;;  %v474_v33 = vld [vmem:[#allocation13 + $0x4] sm:$0xf] }
 0x2ed   : > { %v390_v34 = vld [vmem:[#allocation4] sm:$0xf]  ;;  %v592_v1 = vpop.permute.xlu1 %591 }
 0x2ee   : > { %v395_v35 = vsel %vm361_vm5, %v390_v34, 0  ;;  %v450_v2 = vunpack.c.l.b16 %v390_v34  ;;  %v479_v34 = vsel %vm361_vm5, %v474_v33, 0 }
 0x2ef   : > { %404 = vmatpush.bf16.msra.mxu2 %v395_v35 }
 0x2f0   : > { %v451_v3 = vpack.c.b16 %v450_v2, %v450_v2 }
 0x2f2   : > { %416 = vrot.lane.b32.xlu2 %v415_v25, %s1137_s24 }
 0x2f3   : > { %488 = vmatpush.bf16.msrb.mxu2 %v479_v34 }
 0x2fa   : > { %514 = vrot.lane.b32.xlu2 %v415_v25, %s1138_s30 }
 0x34d   : > { %v386_v42 = vpop.xlane.xlu2 %385 }
 0x34e   : > { %922 = vrcp.f32 %v386_v42 }
 0x354   : > { %v923_v43 = vpop.eup %922 }
 0x355   : > { %v417_v44 = vpop.permute.xlu2 %416  ;;  %v388_v45 = vmul.f32 %v923_v43, %v921_v29 }
 0x356   : > { %810 = vmatmul.msk.bf16.vlgmr.msra.gmra.mxu3 %vm357_vm6, %v417_v44 }
 0x357   : > { %v389_v46 = vpack.c.bf16 %v388_v45, %v388_v45  ;;  %606 = vmatpush.bf16.msra.mxu3 %v597_v53 }
 0x359   : > { %809 = vmatmul.msk.bf16.vlgmr.msra.gmra.mxu2 %vm357_vm6, %v389_v46 }
 0x35a   : > { %583 = vmatpush.bf16.msra.mxu2 %v574_v51 }
 0x35d   : > { %v515_v47 = vpop.permute.xlu2 %514 }
 0x35e   : > { %814 = vmatmul.msk.bf16.vlgmr.msrb.gmra.mxu0 %vm357_vm6, %v515_v47 }
 0x3d9   : > { %v433_v54 = vpop.f32.mrf.mxu3 }
 0x3da   : > { %v434_v55 = vadd.f32 %v1279_v18, %v433_v54 }
 0x3db   : > { %v531_v56 = vpop.f32.mrf.mxu0 }
 0x3dc   : > { %v532_v57 = vadd.f32 %v1279_v18, %v531_v56  ;;  %v406_v58 = vpop.f32.mrf.mxu2  ;;  %v437_v59 = vsel %vm357_vm6, %v434_v55, -inf }
 0x3dd   : > { %v410_v60 = vpack.c.bf16 %v406_v58, %v406_v58  ;;  %438 = vmax.xlane.f32.xlu2 %v437_v59 }
 0x3de   : > { %v535_v61 = vsel %vm357_vm6, %v532_v57, -inf }
 0x3df   : > { %813 = vmatmul.msk.bf16.vlgmr.msrb.gmra.mxu3 %vm357_vm6, %v410_v60  ;;  %536 = vmax.xlane.f32.xlu1 %v535_v61 }
 0x3e1   : > { %v435_v62 = vpop.f32.mrf.mxu3 }
 0x3e3   : > { %v533_v63 = vpop.f32.mrf.mxu0 }
 0x3e4   : > { %v408_v0 = vpop.f32.mrf.mxu2 }
 0x3ef   : > { %817 = vmatmul.msk.bf16.vlgmr.msra.gmra.mxu3 %vm357_vm6, %v592_v1 }
 0x3f8   : > { %452 = vrot.lane.b32.xlu1 %v451_v3, %s1137_s24 }
 0x400   : > { %624 = vrot.lane.b32.xlu1 %v451_v3, %s1136_s28 }
 0x450   : > { %v439_v4 = vpop.xlane.xlu2 %438 }
 0x451   : > { %v440_v5 = vsub.f32 %v434_v55, %v439_v4 }
 0x452   : > { %v537_v6 = vpop.xlane.xlu1 %536 }
 0x453   : > { %v441_v7 = vmul.f32 1.442695, %v440_v5  ;;  %v538_v8 = vsub.f32 %v532_v57, %v537_v6 }
 0x455   : > { %924 = vpow2.f32 %v441_v7  ;;  %v539_v9 = vmul.f32 1.442695, %v538_v8 }
 0x457   : > { %926 = vpow2.f32 %v539_v9 }
 0x45b   : > { %v925_v10 = vpop.eup %924 }
 0x45c   : > { %v443_v11 = vsel %vm357_vm6, %v925_v10, 0.0 }
 0x45d   : > { %444 = vadd.xlane.f32.xlu2 %v443_v11  ;;  %v927_v12 = vpop.eup %926 }
 0x45e   : > { %v541_v14 = vsel %vm357_vm6, %v927_v12, 0.0 }
 0x462   : > { %v1308_v13 = vpop.f32.mrf.mxu3 }
 0x465   : > { %542 = vadd.xlane.f32.xlu2 %v541_v14 }
 0x46a   : > { %v511_v15 = vpop.f32.mrf.mxu3  ;;  %v453_v16 = vpop.permute.xlu1 %452 }
 0x46b   : > { %v458_v17 = vsel %vm361_vm5, %v453_v16, 0 }
 0x46c   : > { %467 = vmatpush.bf16.msrb.mxu1 %v458_v17 }
 0x472   : > { %v608_v19 = vpop.f32.mrf.mxu3  ;;  %v625_v20 = vpop.permute.xlu1 %624 }
 0x473   : > { %v609_v21 = vadd.f32 %v1279_v18, %v608_v19  ;;  %v630_v22 = vsel %vm361_vm5, %v625_v20, 0 }
 0x474   : > { %639 = vmatpush.bf16.msra.mxu0 %v630_v22 }
 0x475   : > { %v612_v23 = vsel %vm357_vm6, %v609_v21, -inf }
 0x476   : > { %613 = vmax.xlane.f32.xlu0 %v612_v23 }
 0x47a   : > { %v610_v24 = vpop.f32.mrf.mxu3 }
 0x4d0   : > { %v445_v25 = vpop.xlane.xlu2 %444 }
 0x4d1   : > { %928 = vrcp.f32 %v445_v25 }
 0x4d7   : > { %v929_v26 = vpop.eup %928 }
 0x4d8   : > { %v447_v27 = vmul.f32 %v929_v26, %v925_v10  ;;  %v543_v37 = vpop.xlane.xlu2 %542 }
 0x4da   : > { %v448_v28 = vpack.c.bf16 %v447_v27, %v447_v27 }
 0x4dc   : > { %811 = vmatmul.msk.bf16.vlgmr.msrb.gmra.mxu1 %vm357_vm6, %v448_v28 }
 0x4e9   : > { %v614_v29 = vpop.xlane.xlu0 %613 }
 0x4ea   : > { %v615_v30 = vsub.f32 %v609_v21, %v614_v29 }
 0x4ec   : > { %v616_v31 = vmul.f32 1.442695, %v615_v30 }
 0x4ee   : > { %930 = vpow2.f32 %v616_v31 }
 0x4ef   : > { %932 = vrcp.f32 %v543_v37 }
 0x4f4   : > { %v931_v32 = vpop.eup %930 }
 0x4f5   : > { %v618_v18 = vsel %vm357_vm6, %v931_v32, 0.0  ;;  %v933_v40 = vpop.eup %932 }
 0x4f6   : > { %619 = vadd.xlane.f32.xlu2 %v618_v18  ;;  %v545_v42 = vmul.f32 %v933_v40, %v927_v12 }
 0x4f8   : > { %v546_v47 = vpack.c.bf16 %v545_v42, %v545_v42 }
 0x50e   : > { %547 = vrot.lane.b32.xlu2 %v451_v3, %s1138_s30 }
 0x559   : > { %v469_v35 = vpop.f32.mrf.mxu1 }
 0x55a   : > { %v473_v36 = vpack.c.bf16 %v469_v35, %v469_v35 }
 0x55c   : > { %812 = vmatmul.msk.bf16.vlgmr.msrb.gmra.mxu2 %vm357_vm6, %v473_v36 }
 0x561   : > { %v471_v38 = vpop.f32.mrf.mxu1 }
 0x569   : > { %v620_v39 = vpop.xlane.xlu2 %619 }
 0x56a   : > { %934 = vrcp.f32 %v620_v39 }
 0x570   : > { %v935_v41 = vpop.eup %934 }
 0x571   : > { %v622_v43 = vmul.f32 %v935_v41, %v931_v32  ;;  %v548_v44 = vpop.permute.xlu2 %547 }
 0x572   : > { %v553_v45 = vsel %vm361_vm5, %v548_v44, 0 }
 0x573   : > { %v623_v46 = vpack.c.bf16 %v622_v43, %v622_v43  ;;  %562 = vmatpush.bf16.msra.mxu1 %v553_v45 }
 0x575   : > { %818 = vmatmul.msk.bf16.vlgmr.msra.gmra.mxu0 %vm357_vm6, %v623_v46 }
 0x576   : > { %815 = vmatmul.msk.bf16.vlgmr.msra.gmra.mxu1 %vm357_vm6, %v546_v47 }
 0x577   : > { %660 = vmatpush.bf16.msrb.mxu1 %v651_v49 }
 0x5df   : > { %v490_v52 = vpop.f32.mrf.mxu2 }
 0x5e0   : > { %v510_v61 = vadd.f32 %v1308_v13, %v490_v52 }
 0x5e7   : > { %v492_v53 = vpop.f32.mrf.mxu2 }
 0x5f2   : > { %v641_v54 = vpop.f32.mrf.mxu0 }
 0x5f3   : > { %v645_v55 = vpack.c.bf16 %v641_v54, %v641_v54  ;;  %v564_v56 = vpop.f32.mrf.mxu1 }
 0x5f4   : > { %v568_v57 = vpack.c.bf16 %v564_v56, %v564_v56 }
 0x5f5   : > { %819 = vmatmul.msk.bf16.vlgmr.msrb.gmra.mxu1 %vm357_vm6, %v645_v55 }
 0x5f6   : > { %816 = vmatmul.msk.bf16.vlgmr.msra.gmra.mxu2 %vm357_vm6, %v568_v57 }
 0x5fa   : > { %v643_v58 = vpop.f32.mrf.mxu0 }
 0x5fb   : > { %v566_v59 = vpop.f32.mrf.mxu1 }
 0x672   : > { %v662_v60 = vpop.f32.mrf.mxu1 }
 0x679   : > { %v585_v62 = vpop.f32.mrf.mxu2 }
 0x67a   : > { %v589_v63 = vadd.f32 %v585_v62, %v510_v61  ;;  %v664_v0 = vpop.f32.mrf.mxu1 }
 0x67c   : > { %v666_v1 = vadd.f32 %v662_v60, %v589_v63 }
 0x67e   : > { %668 = vst.msk [vmem:[%s243_s10] sm:$0xff] %vm266_vm0, %v666_v1 }
 0x67f   : > { %1065 = shalt.err (!%p1062_p13)
}
 0x680   : > { %836 = dma.vmem_to_hbm [thread:$0]  (%p1241_p0), %s684_s11, 128, %s686_s14, %s670_s15  }
 0x681   : > { %v587_v2 = vpop.f32.mrf.mxu2 }
 0x682 PF: > { %s697_s12 = sand.u32 1, %s1106_s19   ;;  %p850_p2 = pnand %p791_p6, %p1248_p5 }
 0x683   : > { %s698_s30 = scalar_lea.sflag [#allocation10], %s697_s12 }
 0x684   : > { %p851_p4 = pneg %p850_p2 }
 0x686   : > { %1101 = dma.done.wait (%p851_p4), %s698_s30, 128  }
 0x687   : > { %1103 = vsyncadd (%p851_p4), %s698_s30, 4294967168  ;;  %s29_s23 = sadd.s32 1, %s1126_s23   ;;  %s1378_s19 = smov %s1110_s20 }
 0x688   : > { %p26_p7 = scmp.ge.s32.totalorder %s29_s23, 4   ;;  %s1379_s20 = smov %s1114_s21 }
 0x689   : > { %s1380_s21 = smov %s1246_s26  ;;  %s1381_s22 = smov %s1122_s0 }
 0x68a   : > { %s1382_s0 = smov %s1384_s13  ;;  %28 = sbr.rel (!%p26_p7) target bundleno = 13 (0xd), region = 90 }
 0x68f   :  { %704 = vsyncpa [#allocation9], 1 }
 0x690   :  { %706 = vsyncpa [#allocation9 + $0x1], 1 }
 0x691   :  { %707 = vsyncpa [#allocation12], 1 }
 0x692   :  { %708 = vsyncpa [#allocation10], 1 }
 0x693   :  { %710 = vsyncpa [#allocation10 + $0x1], 1 }

// kernel: tpu_custom_call.1
= control target key start
LH: loop header
LB: loop body
LE: loop exit
PB: predicated region body
PF: predicated region fallthrough
CT: control target
= control target key end

     0   :  { %s1128_s18 = smov [#allocation7]   ;;  %s1368_s0 = inlined_call_operand.hbm [shape: s32[2], index: 0, kind: input, shape index: {}]   ;;  %s1369_s1 = inlined_call_operand.hbm [shape: bf16[2,8,32], index: 1, kind: input, shape index: {}]   ;;  %s1370_s2 = inlined_call_operand.hbm [shape: bf16[32,96], index: 2, kind: input, shape index: {}]   ;;  %s1371_s3 = inlined_call_operand.hbm [shape: bf16[32,32], index: 3, kind: input, shape index: {}]   ;;  %s1372_s4 = inlined_call_operand.hbm [shape: f32[2,8,32], index: 4, kind: output, shape index: {}]  }
   0x1   :  { %s10_s17 = sshll.u32 %s1368_s0, 4  ;;  %s11_s17 = int_to_ptr.hbm [resolvable:$true] %s10_s17 }
   0x2   :  { %13 = dma.hbm_to_smem %s11_s17, 16, %s1128_s18, [#allocation6] }
   0x3   :  { %1090 = dma.done.wait [#allocation6], 16 }
   0x4   :  { %1091 = vsyncadd [#allocation6], 4294967280 }
   0x5   :  { %16 = sfence }
   0x6   :  { %17 = vsyncpa [#allocation9], 0 }
   0x7   :  { %19 = vsyncpa [#allocation9 + $0x1], 0 }
   0x8   :  { %20 = vsyncpa [#allocation12], 0 }
   0x9   :  { %21 = vsyncpa [#allocation10], 0 }
   0xa   :  { %23 = vsyncpa [#allocation10 + $0x1], 0  ;;  %s1167_s19 = smov 0   ;;  %s1169_s20 = smov 0  }
   0xb   :  { %s1171_s21 = smov 0   ;;  %s1173_s22 = smov 0  }
   0xc   :  { %s1175_s0 = smov 0   ;;  %s1177_s23 = smov 0  }
   0xd LB: > { %s786_s24 = sadd.s32 4294967295, %s1126_s23   ;;  %p788_p0 = scmp.ge.s32.totalorder %s1126_s23, 1  ;;  %s1126_s23 = sphi %s1177_s23, %s29_s23   ;;  %s1122_s0 = sphi %s1175_s0, %s1382_s0   ;;  %s1118_s22 = sphi %s1173_s22, %s1381_s22   ;;  %s1114_s21 = sphi %s1171_s21, %s1380_s21   ;;  %s1110_s20 = sphi %s1169_s20, %s1379_s20   ;;  %s1106_s19 = sphi %s1167_s19, %s1378_s19  }
   0xe   : > { %p1201_p1 = scmp.eq.s32.totalorder %s786_s24, 0  ;;  %p142_p2 = scmp.lt.s32.totalorder %s1126_s23, 3 }
   0xf   : > { %s153_s28 = sshll.u32 %s1370_s2, 4  ;;  %s1129_s30 = smov [#allocation11]   ;;  %s154_s28 = int_to_ptr.hbm [resolvable:$true] %s153_s28 }
  0x10   : > { %p1209_p3 = pnand %p788_p0, %p142_p2  ;;  %s155_s5 = sshll.u32 %s1129_s30, 4  ;;  %s156_s5 = int_to_ptr.vmem [resolvable:$true] %s155_s5 }
  0x11   : > { %p791_p6 = scmp.ge.s32.totalorder %s1126_s23, 2  ;;  %s167_s8 = sshll.u32 %s1371_s3, 4  ;;  %s168_s8 = int_to_ptr.hbm [resolvable:$true] %s167_s8 }
  0x12   : > { %p838_p4 = pneg %p1209_p3  ;;  %s1130_s9 = smov 64  }
  0x13   : > { %s1131_s10 = smov 4   ;;  %s1132_s11 = smov [#allocation13]  }
  0x14   : > { %p839_p5 = pnand %p838_p4, %p1201_p1  ;;  %s169_s12 = sshll.u32 %s1132_s11, 4  ;;  %s170_s12 = int_to_ptr.vmem [resolvable:$true] %s169_s12 }
  0x15   : > { %s41_s13 = sadd.s32 1, %s1122_s0  ;;  %s787_s14 = sadd.s32 4294967294, %s1126_s23  }
  0x16   : > { %841 = dma.hbm_to_vmem [thread:$0]  (!%p839_p5), %s154_s28, 256, %s156_s5, [#allocation12], %s1130_s9, %s1130_s9, %s1131_s10  }
  0x17   : > { %844 = dma.hbm_to_vmem [thread:$0]  (!%p839_p5), %s168_s8, 256, %s170_s12, [#allocation12], %s1130_s9, %s1130_s9, %s1131_s10  }
  0x18   : > { %p43_p7 = scmp.ge.s32.totalorder %s41_s13, 2  ;;  %s48_s15 = sadd.s32 1, %s1114_s21 }
  0x19   : > { %p55_p8 = scmp.ne.s32.totalorder %s1114_s21, %s1110_s20  ;;  %p56_p9 = scmp.eq.s32.totalorder %s1126_s23, 0 }
  0x1a   : > { %s1384_s13 = smov (%p43_p7, %s41_s13), 0  ;;  %p61_p10 = scmp.ne.s32.totalorder %s1110_s20, %s1106_s19 }
  0x1b   : > { %s45_s16 = ssub.s32 %s1122_s0, %s1384_s13  ;;  %p129_p11 = scmp.eq.s32.totalorder %s786_s24, 1 }
  0x1c   : > { %p46_p12 = scmp.eq.s32.totalorder %s45_s16, 0  ;;  %p1237_p13 = por %p1201_p1, %p61_p10 }
  0x1d   : > { %p1241_p0 = por %p129_p11, %p55_p8  ;;  %p135_p2 = scmp.eq.s32.totalorder %s787_s14, 1 }
  0x1e   : > { %s1246_s26 = scalar_select %p46_p12, %s1114_s21, %s48_s15  }
  0x1f   : > { %p57_p4 = por %p56_p9, %p55_p8  ;;  %p1248_p5 = por %p135_p2, %p61_p10 }
  0x20   : > { %s183_s28 = sand.u32 1, %s1114_s21   ;;  %s793_s24 = sshll.u32 %s1122_s0, 2 }
  0x21   : > { %p855_p7 = scmp.lt.s32.totalorder %s1126_s23, 2  ;;  %s792_s30 = sshll.u32 %s183_s28, 2 }
  0x22   : > { %s191_s7 = scalar_lea.hbm %s1369_s1, %s793_s24  ;;  %s187_s9 = scalar_lea.vmem [#allocation8], %s792_s30 }
  0x23   : > { %s193_s8 = sshll.u32 %s191_s7, 4  ;;  %s195_s10 = sshll.u32 %s187_s9, 4  ;;  %s194_s8 = int_to_ptr.hbm [resolvable:$true] %s193_s8  ;;  %s196_s10 = int_to_ptr.vmem [resolvable:$true] %s195_s10 }
  0x24   : > { %p846_p11 = pnand %p855_p7, %p57_p4  ;;  %s184_s11 = scalar_lea.sflag [#allocation9], %s183_s28 }
  0x25   : > { %204 = sbr.rel (%p1209_p3) target bundleno = 1666 (0x682), region = 32  ;;  %s1261_s12 = sand.u32 (!%p1209_p3), 1, %s1110_s20  }
  0x26   : > { %848 = dma.hbm_to_vmem [thread:$0]  (!%p846_p11), %s194_s8, 64, %s196_s10, %s184_s11  }
  0x27   : > { %s795_s14 = sshll.u32 (!%p1209_p3), %s1261_s12, 2  ;;  %s207_s15 = scalar_lea.sflag (!%p1209_p3), [#allocation9], %s1261_s12 }
  0x28   : > { %s210_s16 = scalar_lea.vmem (!%p1209_p3), [#allocation8], %s795_s14 }
  0x2a   : > { %1093 = dma.done.wait (%p1237_p13), %s207_s15, 64  }
  0x2b   : > { %1095 = vsyncadd (%p1237_p13), %s207_s15, 4294967232 }
  0x2c   : > { %1097 = dma.done.wait (%p1201_p1), [#allocation12], 512  }
  0x2d   : > { %1099 = vsyncadd (%p1201_p1), [#allocation12], 4294966784  ;;  %v825_v0 = vld [vmem:[#allocation11 + $0x8] sm:$0xff]  ;;  %v824_v1 = vld [vmem:[#allocation11] sm:$0xff]  ;;  %vm266_vm0 = vcmask 261120   ;;  %s1133_s29 = smov 96   ;;  %v338_v8 = vlaneseq }
  0x2e   : > { %276 = vmatpush.bf16.msra.mxu0 %v825_v0  ;;  %v249_v2 = vld [vmem:[%s210_s16] sm:$0xf]  ;;  %vm285_vm1 = vcmask 257024   ;;  %s340_s25 = sld [smem:[#allocation7 + %s1118_s22]]  ;;  %vm344_vm2 = vcmask 57344   ;;  %vm327_vm4 = vcmask 60416  }
  0x2f   : > { %v339_v10 = vand.u32 127, %v338_v8  ;;  %v1134_v11 = vmov -1.7677669e+08   ;;  %vm361_vm5 = vcmask 1043456   ;;  %vm357_vm6 = vcmask 64512   ;;  %s1135_s17 = smov 64  }
  0x30   : > { %s1136_s28 = smov 104   ;;  %s1137_s24 = smov 120   ;;  %v411_v48 = vld [vmem:[#allocation13] sm:$0xf] }
  0x31   : > { %s1138_s30 = smov 112   ;;  %v498_v49 = vsel %vm361_vm5, %v411_v48, 0  ;;  %v646_v48 = vld [vmem:[#allocation13 + $0xc] sm:$0xf]  ;;  %s798_s5 = sshll.u32 %s1261_s12, 3 }
  0x32   : > { %277 = vmatpush.bf16.msra.mxu0 %v824_v1  ;;  %s821_s6 = sshll.u32 %s1118_s22, 3  ;;  %s243_s10 = scalar_lea.vmem [#allocation14], %s798_s5 }
  0x33   : > { %s681_s9 = scalar_lea.hbm %s1372_s4, %s821_s6  ;;  %s683_s11 = sshll.u32 %s243_s10, 4  ;;  %s684_s11 = int_to_ptr.vmem [resolvable:$true] %s683_s11 }
  0x34   : > { %v341_v9 = vstv %s340_s25  ;;  %s685_s14 = sshll.u32 %s681_s9, 4  ;;  %s670_s15 = scalar_lea.sflag [#allocation10], %s1261_s12  ;;  %s686_s14 = int_to_ptr.hbm [resolvable:$true] %s685_s14 }
  0x35   : > { %807 = vmatmul.msk.bf16.vlgmr.msra.gmra.mxu0 %vm266_vm0, %v249_v2  ;;  %vm342_vm3 = vcmp.lt.s32.totalorder %v339_v10, %v341_v9  ;;  %s1052_s22 = sshra.s32 %s686_s14, 4  ;;  %s1053_s22 = int_to_ptr.hbm [resolvable:$true] %s1052_s22 }
  0x36   : > { %v343_v12 = vsel %vm342_vm3, 0.0, %v1134_v11  ;;  %s1054_s16 = scalar_lea.hbm %s1053_s22, 8  ;;  %p1059_p9 = scmp.lt.s32.totalorder %s1053_s22, %s1372_s4 }
  0x37   : > { %345 = vst.msk [vmem:[#allocation5] sm:$0x1] %vm344_vm2, %v343_v12  ;;  %p1055_p1 = scmp.ne.s32.totalorder %s1053_s22, %s1054_s16 }
  0x39   : > { %p1056_p3 = pnand %p1055_p1, %p1241_p0 }
  0x3b   : > { %p1057_p8 = pneg %p1056_p3 }
  0x3e   : > { %v1279_v18 = vld [vmem:[#allocation5] ss:$0 sm:$0xff] }
  0xb2   : > { %v279_v3 = vpop.f32.mrf.mxu0 }
  0xb3   : > { %v283_v4 = vmul.f32 0.17677669, %v279_v3  ;;  %288 = vrot.lane.b32.xlu0 %v279_v3, %s1133_s29  ;;  %v332_v23 = vpack.c.bf16 %v279_v3, %v279_v3 }
  0xb5   : > { %v284_v5 = vpack.c.bf16 %v283_v4, %v283_v4 }
  0xb7   : > { %286 = vst.msk [vmem:[#allocation2] sm:$0xf] %vm285_vm1, %v284_v5 }
  0xba   : > { %v281_v6 = vpop.f32.mrf.mxu0 }
  0xbe   : > { %v351_v17 = vld [vmem:[#allocation2] sm:$0xf] }
  0xbf   : > { %v414_v24 = vunpack.c.l.b16 %v351_v17 }
  0xc1   : > { %v415_v25 = vpack.c.b16 %v414_v24, %v414_v24 }
 0x125   : > { %v289_v7 = vpop.permute.xlu0 %288 }
 0x126   : > { %291 = vxpose.xlu0.b32.start.end [1/1] (short) (narrow) %v289_v7, 32 }
 0x1ca   : > { %v307_v13 = vpop.trf.xlu0 }
 0x1cb   : > { %v323_v14 = vpack.c.bf16 %v307_v13, %v307_v13 }
 0x1cd   : > { %328 = vst.msk [vmem:[#allocation3] sm:$0xf] %vm327_vm4, %v323_v14 }
 0x1d2   : > { %v308_v31 = vpop.trf.xlu0 }
 0x1d3   : > { %v324_v32 = vpack.c.bf16 %v308_v31, %v308_v31 }
 0x1d4   : > { %v353_v15 = vld [vmem:[#allocation3] sm:$0xf] }
 0x1d5   : > { %v363_v16 = vsel %vm361_vm5, %v353_v15, 0  ;;  %329 = vst.msk [vmem:[#allocation3 + $0x4] sm:$0xf] %vm327_vm4, %v324_v32 }
 0x1d6   : > { %372 = vmatpush.bf16.msra.mxu1 %v363_v16 }
 0x1d9   : > { %808 = vmatmul.msk.bf16.vlgmr.msra.gmra.mxu1 %vm357_vm6, %v351_v17 }
 0x1da   : > { %v309_v36 = vpop.trf.xlu0 }
 0x1db   : > { %v325_v38 = vpack.c.bf16 %v309_v36, %v309_v36 }
 0x1dc   : > { %v412_v37 = vld [vmem:[#allocation3 + $0x4] sm:$0xf] }
 0x1dd   : > { %v422_v39 = vsel %vm361_vm5, %v412_v37, 0  ;;  %330 = vst.msk [vmem:[#allocation3 + $0x8] sm:$0xf] %vm327_vm4, %v325_v38 }
 0x1de   : > { %431 = vmatpush.bf16.msra.mxu3 %v422_v39 }
 0x1e2   : > { %507 = vmatpush.bf16.msrb.mxu3 %v498_v49  ;;  %v310_v50 = vpop.trf.xlu0  ;;  %v651_v49 = vsel %vm361_vm5, %v646_v48, 0 }
 0x1e3   : > { %v326_v51 = vpack.c.bf16 %v310_v50, %v310_v50  ;;  %v569_v50 = vld [vmem:[#allocation13 + $0x8] sm:$0xf] }
 0x1e4   : > { %v513_v40 = vld [vmem:[#allocation3 + $0x8] sm:$0xf] }
 0x1e5   : > { %v520_v41 = vsel %vm361_vm5, %v513_v40, 0  ;;  %331 = vst.msk [vmem:[#allocation3 + $0xc] sm:$0xf] %vm327_vm4, %v326_v51  ;;  %v574_v51 = vsel %vm361_vm5, %v569_v50, 0 }
 0x1e6   : > { %529 = vmatpush.bf16.msrb.mxu0 %v520_v41 }
 0x1ec   : > { %v590_v52 = vld [vmem:[#allocation3 + $0xc] sm:$0xf] }
 0x1ed   : > { %v597_v53 = vsel %vm361_vm5, %v590_v52, 0 }
 0x256   : > { %v374_v19 = vpop.f32.mrf.mxu1 }
 0x257   : > { %v375_v20 = vadd.f32 %v1279_v18, %v374_v19 }
 0x259   : > { %v378_v21 = vsel %vm357_vm6, %v375_v20, -inf }
 0x25a   : > { %379 = vmax.xlane.f32.xlu1 %v378_v21 }
 0x25e   : > { %v376_v22 = vpop.f32.mrf.mxu1 }
 0x273   : > { %334 = vrot.lane.b32.xlu1 %v332_v23, %s1135_s17  ;;  %s1058_s17 = scalar_lea.hbm %s1372_s4, 16 }
 0x274   : > { %p1060_p10 = scmp.lt.s32.totalorder %s1058_s17, %s1054_s16 }
 0x276   : > { %p1061_p12 = por %p1060_p10, %p1059_p9 }
 0x278   : > { %p1062_p13 = pnand %p1061_p12, %p1057_p8 }
 0x27b   : > { %591 = vrot.lane.b32.xlu1 %v415_v25, %s1136_s28 }
 0x2cd   : > { %v380_v26 = vpop.xlane.xlu1 %379 }
 0x2ce   : > { %v381_v27 = vsub.f32 %v375_v20, %v380_v26 }
 0x2d0   : > { %v382_v28 = vmul.f32 1.442695, %v381_v27 }
 0x2d2   : > { %920 = vpow2.f32 %v382_v28 }
 0x2d8   : > { %v921_v29 = vpop.eup %920 }
 0x2d9   : > { %v384_v30 = vsel %vm357_vm6, %v921_v29, 0.0 }
 0x2da   : > { %385 = vadd.xlane.f32.xlu2 %v384_v30 }
 0x2e5   : > { %v335_v33 = vpop.permute.xlu1 %334 }
 0x2e6   : > { %337 = vst.msk [vmem:[#allocation4] sm:$0xf] %vm285_vm1, %v335_v33  ;;  %v474_v33 = vld [vmem:[#allocation13 + $0x4] sm:$0xf] }
 0x2ed   : > { %v390_v34 = vld [vmem:[#allocation4] sm:$0xf]  ;;  %v592_v1 = vpop.permute.xlu1 %591 }
 0x2ee   : > { %v395_v35 = vsel %vm361_vm5, %v390_v34, 0  ;;  %v450_v2 = vunpack.c.l.b16 %v390_v34  ;;  %v479_v34 = vsel %vm361_vm5, %v474_v33, 0 }
 0x2ef   : > { %404 = vmatpush.bf16.msra.mxu2 %v395_v35 }
 0x2f0   : > { %v451_v3 = vpack.c.b16 %v450_v2, %v450_v2 }
 0x2f2   : > { %416 = vrot.lane.b32.xlu2 %v415_v25, %s1137_s24 }
 0x2f3   : > { %488 = vmatpush.bf16.msrb.mxu2 %v479_v34 }
 0x2fa   : > { %514 = vrot.lane.b32.xlu2 %v415_v25, %s1138_s30 }
 0x34d   : > { %v386_v42 = vpop.xlane.xlu2 %385 }
 0x34e   : > { %922 = vrcp.f32 %v386_v42 }
 0x354   : > { %v923_v43 = vpop.eup %922 }
 0x355   : > { %v417_v44 = vpop.permute.xlu2 %416  ;;  %v388_v45 = vmul.f32 %v923_v43, %v921_v29 }
 0x356   : > { %810 = vmatmul.msk.bf16.vlgmr.msra.gmra.mxu3 %vm357_vm6, %v417_v44 }
 0x357   : > { %v389_v46 = vpack.c.bf16 %v388_v45, %v388_v45  ;;  %606 = vmatpush.bf16.msra.mxu3 %v597_v53 }
 0x359   : > { %809 = vmatmul.msk.bf16.vlgmr.msra.gmra.mxu2 %vm357_vm6, %v389_v46 }
 0x35a   : > { %583 = vmatpush.bf16.msra.mxu2 %v574_v51 }
 0x35d   : > { %v515_v47 = vpop.permute.xlu2 %514 }
 0x35e   : > { %814 = vmatmul.msk.bf16.vlgmr.msrb.gmra.mxu0 %vm357_vm6, %v515_v47 }
 0x3d9   : > { %v433_v54 = vpop.f32.mrf.mxu3 }
 0x3da   : > { %v434_v55 = vadd.f32 %v1279_v18, %v433_v54 }
 0x3db   : > { %v531_v56 = vpop.f32.mrf.mxu0 }
 0x3dc   : > { %v532_v57 = vadd.f32 %v1279_v18, %v531_v56  ;;  %v406_v58 = vpop.f32.mrf.mxu2  ;;  %v437_v59 = vsel %vm357_vm6, %v434_v55, -inf }
 0x3dd   : > { %v410_v60 = vpack.c.bf16 %v406_v58, %v406_v58  ;;  %438 = vmax.xlane.f32.xlu2 %v437_v59 }
 0x3de   : > { %v535_v61 = vsel %vm357_vm6, %v532_v57, -inf }
 0x3df   : > { %813 = vmatmul.msk.bf16.vlgmr.msrb.gmra.mxu3 %vm357_vm6, %v410_v60  ;;  %536 = vmax.xlane.f32.xlu1 %v535_v61 }
 0x3e1   : > { %v435_v62 = vpop.f32.mrf.mxu3 }
 0x3e3   : > { %v533_v63 = vpop.f32.mrf.mxu0 }
 0x3e4   : > { %v408_v0 = vpop.f32.mrf.mxu2 }
 0x3ef   : > { %817 = vmatmul.msk.bf16.vlgmr.msra.gmra.mxu3 %vm357_vm6, %v592_v1 }
 0x3f8   : > { %452 = vrot.lane.b32.xlu1 %v451_v3, %s1137_s24 }
 0x400   : > { %624 = vrot.lane.b32.xlu1 %v451_v3, %s1136_s28 }
 0x450   : > { %v439_v4 = vpop.xlane.xlu2 %438 }
 0x451   : > { %v440_v5 = vsub.f32 %v434_v55, %v439_v4 }
 0x452   : > { %v537_v6 = vpop.xlane.xlu1 %536 }
 0x453   : > { %v441_v7 = vmul.f32 1.442695, %v440_v5  ;;  %v538_v8 = vsub.f32 %v532_v57, %v537_v6 }
 0x455   : > { %924 = vpow2.f32 %v441_v7  ;;  %v539_v9 = vmul.f32 1.442695, %v538_v8 }
 0x457   : > { %926 = vpow2.f32 %v539_v9 }
 0x45b   : > { %v925_v10 = vpop.eup %924 }
 0x45c   : > { %v443_v11 = vsel %vm357_vm6, %v925_v10, 0.0 }
 0x45d   : > { %444 = vadd.xlane.f32.xlu2 %v443_v11  ;;  %v927_v12 = vpop.eup %926 }
 0x45e   : > { %v541_v14 = vsel %vm357_vm6, %v927_v12, 0.0 }
 0x462   : > { %v1308_v13 = vpop.f32.mrf.mxu3 }
 0x465   : > { %542 = vadd.xlane.f32.xlu2 %v541_v14 }
 0x46a   : > { %v511_v15 = vpop.f32.mrf.mxu3  ;;  %v453_v16 = vpop.permute.xlu1 %452 }
 0x46b   : > { %v458_v17 = vsel %vm361_vm5, %v453_v16, 0 }
 0x46c   : > { %467 = vmatpush.bf16.msrb.mxu1 %v458_v17 }
 0x472   : > { %v608_v19 = vpop.f32.mrf.mxu3  ;;  %v625_v20 = vpop.permute.xlu1 %624 }
 0x473   : > { %v609_v21 = vadd.f32 %v1279_v18, %v608_v19  ;;  %v630_v22 = vsel %vm361_vm5, %v625_v20, 0 }
 0x474   : > { %639 = vmatpush.bf16.msra.mxu0 %v630_v22 }
 0x475   : > { %v612_v23 = vsel %vm357_vm6, %v609_v21, -inf }
 0x476   : > { %613 = vmax.xlane.f32.xlu0 %v612_v23 }
 0x47a   : > { %v610_v24 = vpop.f32.mrf.mxu3 }
 0x4d0   : > { %v445_v25 = vpop.xlane.xlu2 %444 }
 0x4d1   : > { %928 = vrcp.f32 %v445_v25 }
 0x4d7   : > { %v929_v26 = vpop.eup %928 }
 0x4d8   : > { %v447_v27 = vmul.f32 %v929_v26, %v925_v10  ;;  %v543_v37 = vpop.xlane.xlu2 %542 }
 0x4da   : > { %v448_v28 = vpack.c.bf16 %v447_v27, %v447_v27 }
 0x4dc   : > { %811 = vmatmul.msk.bf16.vlgmr.msrb.gmra.mxu1 %vm357_vm6, %v448_v28 }
 0x4e9   : > { %v614_v29 = vpop.xlane.xlu0 %613 }
 0x4ea   : > { %v615_v30 = vsub.f32 %v609_v21, %v614_v29 }
 0x4ec   : > { %v616_v31 = vmul.f32 1.442695, %v615_v30 }
 0x4ee   : > { %930 = vpow2.f32 %v616_v31 }
 0x4ef   : > { %932 = vrcp.f32 %v543_v37 }
 0x4f4   : > { %v931_v32 = vpop.eup %930 }
 0x4f5   : > { %v618_v18 = vsel %vm357_vm6, %v931_v32, 0.0  ;;  %v933_v40 = vpop.eup %932 }
 0x4f6   : > { %619 = vadd.xlane.f32.xlu2 %v618_v18  ;;  %v545_v42 = vmul.f32 %v933_v40, %v927_v12 }
 0x4f8   : > { %v546_v47 = vpack.c.bf16 %v545_v42, %v545_v42 }
 0x50e   : > { %547 = vrot.lane.b32.xlu2 %v451_v3, %s1138_s30 }
 0x559   : > { %v469_v35 = vpop.f32.mrf.mxu1 }
 0x55a   : > { %v473_v36 = vpack.c.bf16 %v469_v35, %v469_v35 }
 0x55c   : > { %812 = vmatmul.msk.bf16.vlgmr.msrb.gmra.mxu2 %vm357_vm6, %v473_v36 }
 0x561   : > { %v471_v38 = vpop.f32.mrf.mxu1 }
 0x569   : > { %v620_v39 = vpop.xlane.xlu2 %619 }
 0x56a   : > { %934 = vrcp.f32 %v620_v39 }
 0x570   : > { %v935_v41 = vpop.eup %934 }
 0x571   : > { %v622_v43 = vmul.f32 %v935_v41, %v931_v32  ;;  %v548_v44 = vpop.permute.xlu2 %547 }
 0x572   : > { %v553_v45 = vsel %vm361_vm5, %v548_v44, 0 }
 0x573   : > { %v623_v46 = vpack.c.bf16 %v622_v43, %v622_v43  ;;  %562 = vmatpush.bf16.msra.mxu1 %v553_v45 }
 0x575   : > { %818 = vmatmul.msk.bf16.vlgmr.msra.gmra.mxu0 %vm357_vm6, %v623_v46 }
 0x576   : > { %815 = vmatmul.msk.bf16.vlgmr.msra.gmra.mxu1 %vm357_vm6, %v546_v47 }
 0x577   : > { %660 = vmatpush.bf16.msrb.mxu1 %v651_v49 }
 0x5df   : > { %v490_v52 = vpop.f32.mrf.mxu2 }
 0x5e0   : > { %v510_v61 = vadd.f32 %v1308_v13, %v490_v52 }
 0x5e7   : > { %v492_v53 = vpop.f32.mrf.mxu2 }
 0x5f2   : > { %v641_v54 = vpop.f32.mrf.mxu0 }
 0x5f3   : > { %v645_v55 = vpack.c.bf16 %v641_v54, %v641_v54  ;;  %v564_v56 = vpop.f32.mrf.mxu1 }
 0x5f4   : > { %v568_v57 = vpack.c.bf16 %v564_v56, %v564_v56 }
 0x5f5   : > { %819 = vmatmul.msk.bf16.vlgmr.msrb.gmra.mxu1 %vm357_vm6, %v645_v55 }
 0x5f6   : > { %816 = vmatmul.msk.bf16.vlgmr.msra.gmra.mxu2 %vm357_vm6, %v568_v57 }
 0x5fa   : > { %v643_v58 = vpop.f32.mrf.mxu0 }
 0x5fb   : > { %v566_v59 = vpop.f32.mrf.mxu1 }
 0x672   : > { %v662_v60 = vpop.f32.mrf.mxu1 }
 0x679   : > { %v585_v62 = vpop.f32.mrf.mxu2 }
 0x67a   : > { %v589_v63 = vadd.f32 %v585_v62, %v510_v61  ;;  %v664_v0 = vpop.f32.mrf.mxu1 }
 0x67c   : > { %v666_v1 = vadd.f32 %v662_v60, %v589_v63 }
 0x67e   : > { %668 = vst.msk [vmem:[%s243_s10] sm:$0xff] %vm266_vm0, %v666_v1 }
 0x67f   : > { %1065 = shalt.err (!%p1062_p13)
}
 0x680   : > { %836 = dma.vmem_to_hbm [thread:$0]  (%p1241_p0), %s684_s11, 128, %s686_s14, %s670_s15  }
 0x681   : > { %v587_v2 = vpop.f32.mrf.mxu2 }
 0x682 PF: > { %s697_s12 = sand.u32 1, %s1106_s19   ;;  %p850_p2 = pnand %p791_p6, %p1248_p5 }
 0x683   : > { %s698_s30 = scalar_lea.sflag [#allocation10], %s697_s12 }
 0x684   : > { %p851_p4 = pneg %p850_p2 }
 0x686   : > { %1101 = dma.done.wait (%p851_p4), %s698_s30, 128  }
 0x687   : > { %1103 = vsyncadd (%p851_p4), %s698_s30, 4294967168  ;;  %s29_s23 = sadd.s32 1, %s1126_s23   ;;  %s1378_s19 = smov %s1110_s20 }
 0x688   : > { %p26_p7 = scmp.ge.s32.totalorder %s29_s23, 4   ;;  %s1379_s20 = smov %s1114_s21 }
 0x689   : > { %s1380_s21 = smov %s1246_s26  ;;  %s1381_s22 = smov %s1122_s0 }
 0x68a   : > { %s1382_s0 = smov %s1384_s13  ;;  %28 = sbr.rel (!%p26_p7) target bundleno = 13 (0xd), region = 90 }
 0x68f   :  { %704 = vsyncpa [#allocation9], 1 }
 0x690   :  { %706 = vsyncpa [#allocation9 + $0x1], 1 }
 0x691   :  { %707 = vsyncpa [#allocation12], 1 }
 0x692   :  { %708 = vsyncpa [#allocation10], 1 }
 0x693   :  { %710 = vsyncpa [#allocation10 + $0x1], 1 }

</bundles_post_ra>
